<compile_context>
chip_gen: v5e
topology: v5e:2x2
jax: 0.10.0
libtpu: 0.0.40
codegen_flags: <defaults>
</compile_context>

<pallas_src>
import functools

import jax
import jax.numpy as jnp
import numpy as np
from jax.experimental import pallas as pl
from jax.experimental.pallas import tpu as pltpu


VMEM_LIMIT = 40 * 1024 * 1024     # scoped VMEM cap (safe on v5e/v6e and v7x's 64 MiB)
TILE_BUDGET = 20 * 1024 * 1024    # per-step VMEM byte budget used to size tiles
M_CAP = 2048                      # max matmul rows per grid step


def _round_up(a, b):
    return (a + b - 1) // b * b


# --------------------------------------------------------------------------
# Pallas kernels
# --------------------------------------------------------------------------
def _matmul_bias_act_kernel(x_ref, w_ref, b_ref, o_ref, *, act):
    # x_ref: (TM, K) bf16; w_ref: (K, TN) bf16; b_ref: (1, TN) f32; o_ref: (TM, TN) bf16.
    out = jnp.dot(x_ref[...], w_ref[...], preferred_element_type=jnp.float32)
    out = out + b_ref[...]
    if act == "relu":
        out = jnp.maximum(out, 0.0)
    elif act == "sigmoid":
        out = jax.nn.sigmoid(out)
    o_ref[...] = out.astype(o_ref.dtype)


def _conv_dyfold_kernel(x_ref, w_ref, b_ref, o_ref, acc_ref, *, w_row, m, act):
    # x_ref  : (1, 1, Lw, 3Cin) bf16  -- dx-folded zero-padded rows (+2 halo rows)
    # w_ref  : (3, 3Cin, Cout)  bf16  -- one (3Cin, Cout) slab per dy tap
    # b_ref  : (1, Cout)        f32
    # o_ref  : (1, 1, M, Cout)  bf16  (M = TH*W; rows have no wrap columns)
    # acc_ref: (M, Cout)        f32 VMEM scratch
    # Row offsets 0, W, 2W are multiples of W (>= 16 on these layers) -> aligned.
    acc_ref[...] = jnp.dot(x_ref[0, 0, 0:m, :], w_ref[0],
                           preferred_element_type=jnp.float32)
    acc_ref[...] += jnp.dot(x_ref[0, 0, w_row:w_row + m, :], w_ref[1],
                            preferred_element_type=jnp.float32)
    acc_ref[...] += jnp.dot(x_ref[0, 0, 2 * w_row:2 * w_row + m, :], w_ref[2],
                            preferred_element_type=jnp.float32)
    out = acc_ref[...] + b_ref[...]
    if act == "relu":
        out = jnp.maximum(out, 0.0)
    elif act == "sigmoid":
        out = jax.nn.sigmoid(out)
    o_ref[0, 0] = out.astype(o_ref.dtype)


# --------------------------------------------------------------------------
# VMEM-budget-driven tile sizing
# --------------------------------------------------------------------------
def _choose_tm(P, K, TN, budget=TILE_BUDGET, cap=M_CAP):
    """Rows per step for the im2col matmul path."""
    p8 = _round_up(P, 8)
    fixed = 2 * K * TN * 2                       # double-buffered weight tile (bf16)
    per_row = 2 * K * 2 + 2 * TN * 2 + TN * 4    # dbl-buf LHS + dbl-buf out + f32 work
    avail = max(budget - fixed, 8 * per_row)
    tm = min(p8, cap, avail // per_row)
    tm = max(8, (tm // 8) * 8)
    if tm >= 256:
        tm = (tm // 256) * 256                   # 256-aligned (also 128-mult for v5e)
    if tm > p8:
        tm = p8
    return tm


def _choose_th(H, W, C3, Cout, budget=TILE_BUDGET, cap_m=M_CAP):
    """Output rows per step for the dx-fold path (largest divisor of H that fits)."""
    best = 1
    for th in range(1, H + 1):
        if H % th:
            continue
        m = th * W
        if m > cap_m:
            break
        lw = (th + 2) * W
        need = (2 * lw * C3 * 2 + 2 * 3 * C3 * Cout * 2
                + 2 * m * Cout * 2 + m * Cout * 4)
        if need <= budget:
            best = th
    return best


# --------------------------------------------------------------------------
# Conv wrappers
# --------------------------------------------------------------------------
def _conv_im2col(x, w, b, act):
    """Path A: fold all 9 taps into K; single matmul per tile; batch folded into rows."""
    N, H, W, Cin = x.shape
    Cout = w.shape[-1]
    K = 9 * Cin
    Kp = _round_up(K, 16)
    Cp = Cout if Cout >= 64 else 128             # lane-dense stores for the Cout=1 conv

    xp = jnp.pad(x, ((0, 0), (1, 1), (1, 1), (0, 0)))
    patches = jnp.concatenate(
        [xp[:, dy:dy + H, dx:dx + W, :] for dy in range(3) for dx in range(3)],
        axis=-1).reshape(N * H * W, K)
    P = N * H * W

    wk = w.reshape(K, Cout)
    if Kp != K:
        patches = jnp.pad(patches, ((0, 0), (0, Kp - K)))
        wk = jnp.pad(wk, ((0, Kp - K), (0, 0)))
    if Cp != Cout:
        wk = jnp.pad(wk, ((0, 0), (0, Cp - Cout)))
        b = jnp.pad(b, ((0, Cp - Cout),))

    TN = Cp if Cp <= 256 else 256                # Cout split keeps >=2 parallel steps
    TM = _choose_tm(P, Kp, TN)
    Pp = _round_up(P, TM)
    if Pp != P:
        patches = jnp.pad(patches, ((0, Pp - P), (0, 0)))

    patches = patches.astype(jnp.bfloat16)
    wk = wk.astype(jnp.bfloat16)
    bb = b.reshape(1, Cp).astype(jnp.float32)

    kernel = functools.partial(_matmul_bias_act_kernel, act=act)
    out = pl.pallas_call(
        kernel,
        out_shape=jax.ShapeDtypeStruct((Pp, Cp), jnp.bfloat16),
        grid_spec=pltpu.PrefetchScalarGridSpec(
            num_scalar_prefetch=0,
            grid=(Pp // TM, Cp // TN),
            in_specs=[
                pl.BlockSpec((TM, Kp), lambda i, j: (i, 0)),
                pl.BlockSpec((Kp, TN), lambda i, j: (0, j)),
                pl.BlockSpec((1, TN), lambda i, j: (0, j)),
            ],
            out_specs=pl.BlockSpec((TM, TN), lambda i, j: (i, j)),
        ),
        compiler_params=pltpu.CompilerParams(
            dimension_semantics=("parallel", "parallel"),
            vmem_limit_bytes=VMEM_LIMIT,
        ),
    )(patches, wk, bb)

    if Pp != P or Cp != Cout:
        out = out[:P, :Cout]
    return out.reshape(N, H, W, Cout)


def _conv_dyfold(x, w, b, act):
    """Path B: fold dx into channels; 3 sublane-aligned dy matmuls per row tile."""
    N, H, W, Cin = x.shape
    Cout = w.shape[-1]
    C3 = 3 * Cin

    xp = jnp.pad(x, ((0, 0), (1, 1), (1, 1), (0, 0)))                  # (N,H+2,W+2,Cin)
    xc = jnp.concatenate([xp[:, :, d:d + W, :] for d in range(3)], -1)  # (N,H+2,W,3Cin)
    xf = xc.reshape(N, (H + 2) * W, C3)

    TH = _choose_th(H, W, C3, Cout)
    T = H // TH
    M = TH * W
    Lw = (TH + 2) * W
    if T == 1:
        xwin = xf[:, None]                                              # free reshape
    else:
        xwin = jnp.stack(
            [xf[:, t * TH * W: t * TH * W + Lw] for t in range(T)], axis=1)

    xwin = xwin.astype(jnp.bfloat16)
    wk = w.reshape(3, C3, Cout).astype(jnp.bfloat16)
    bb = b.reshape(1, Cout).astype(jnp.float32)

    kernel = functools.partial(_conv_dyfold_kernel, w_row=W, m=M, act=act)
    out = pl.pallas_call(
        kernel,
        out_shape=jax.ShapeDtypeStruct((N, T, M, Cout), jnp.bfloat16),
        grid_spec=pltpu.PrefetchScalarGridSpec(
            num_scalar_prefetch=0,
            grid=(N, T),
            in_specs=[
                pl.BlockSpec((1, 1, Lw, C3), lambda n, t: (n, t, 0, 0)),
                pl.BlockSpec((3, C3, Cout), lambda n, t: (0, 0, 0)),
                pl.BlockSpec((1, Cout), lambda n, t: (0, 0)),
            ],
            out_specs=pl.BlockSpec((1, 1, M, Cout), lambda n, t: (n, t, 0, 0)),
            scratch_shapes=[pltpu.VMEM((M, Cout), jnp.float32)],
        ),
        compiler_params=pltpu.CompilerParams(
            dimension_semantics=("parallel", "parallel"),
            vmem_limit_bytes=VMEM_LIMIT,
        ),
    )(xwin, wk, bb)

    # (N, T, TH*W, Cout) is contiguous row-major -> free reshape, no slicing.
    return out.reshape(N, H, W, Cout)


def conv3x3_bias_act(x, w, b, act):
    """x: (N,H,W,Cin); w: (3,3,Cin,Cout) with BN folded; b: (Cout,) f32."""
    N, H, W, Cin = x.shape
    Cout = w.shape[-1]
    use_im2col = (Cin <= 8) or (Cout < 64) or (H * W <= 64) or (W % 8 != 0)
    if use_im2col:
        return _conv_im2col(x, w, b, act)
    return _conv_dyfold(x, w, b, act)


# --------------------------------------------------------------------------
# Glue ops (plain JAX): LRN, max-pool with packed int8 indices, max-unpool
# --------------------------------------------------------------------------
def local_response_norm(x, size=3, alpha=1e-4, beta=0.75, k=1.0):
    # Across-channel LRN (channels last), matching F.local_response_norm.
    sq = x * x
    C = x.shape[-1]
    pad_lo, pad_hi = size // 2, (size - 1) // 2
    sq_p = jnp.pad(sq, ((0, 0), (0, 0), (0, 0), (pad_lo, pad_hi)))
    win = sum(sq_p[..., i:i + C] for i in range(size))
    div = win / size * alpha + k
    return x / jnp.power(div, beta)


def maxpool2x2(x):
    # MaxPool2d(2,2) with packed int8 window-argmax indices (first max wins).
    N, H, W, C = x.shape
    xr = x.reshape(N, H // 2, 2, W // 2, 2, C)
    xr = xr.transpose(0, 1, 3, 2, 4, 5).reshape(N, H // 2, W // 2, 4, C)
    pooled = jnp.max(xr, axis=3)
    idx = jnp.argmax(xr, axis=3).astype(jnp.int8)
    return pooled, idx


def maxunpool2x2(p, idx):
    # MaxUnpool2d(2,2) driven by the packed int8 indices.
    N, h, w, C = p.shape
    onehot = idx[:, :, :, None, :] == jnp.arange(4, dtype=jnp.int8).reshape(1, 1, 1, 4, 1)
    scattered = jnp.where(onehot, p[:, :, :, None, :], jnp.zeros((), p.dtype))
    y = scattered.reshape(N, h, w, 2, 2, C).transpose(0, 1, 3, 2, 4, 5)
    return y.reshape(N, 2 * h, 2 * w, C)


# --------------------------------------------------------------------------
# Parameters (deterministic init in-script, eval-mode BN folded in)
# --------------------------------------------------------------------------
def layer_table(in_chn=3, out_chn=1):
    return [
        ("En11", in_chn, 64), ("En12", 64, 64),
        ("En21", 64, 128), ("En22", 128, 128),
        ("En31", 128, 256), ("En32", 256, 256), ("En33", 256, 256),
        ("En41", 256, 512), ("En42", 512, 512), ("En43", 512, 512),
        ("En51", 512, 512), ("En52", 512, 512), ("En53", 512, 512),
        ("De53", 512, 512), ("De52", 512, 512), ("De51", 512, 512),
        ("De43", 512, 512), ("De42", 512, 512), ("De41", 512, 256),
        ("De33", 256, 256), ("De32", 256, 256), ("De31", 256, 128),
        ("De22", 128, 128), ("De21", 128, 64),
        ("De12", 64, 64), ("De11", 64, out_chn),
    ]


def init_params(key, in_chn=3, out_chn=1):
    eps = 1e-5
    bn_scale = 1.0 / np.sqrt(1.0 + eps)   # eval BN: gamma=1, beta=0, mean=0, var=1
    params = {}
    for name, cin, cout in layer_table(in_chn, out_chn):
        key, kw, kb = jax.random.split(key, 3)
        bound = 1.0 / np.sqrt(cin * 9)
        w = jax.random.uniform(kw, (3, 3, cin, cout), jnp.float32, -bound, bound)
        b = jax.random.uniform(kb, (cout,), jnp.float32, -bound, bound)
        if name != "De11":                 # final conv has no BN in forward()
            w = w * bn_scale
            b = b * bn_scale
        params[name] = (w, b)
    return params


# --------------------------------------------------------------------------
# Full SegNet forward
# --------------------------------------------------------------------------
def segnet_forward(x_nchw, params):
    def cbr(x, name, act="relu"):
        w, b = params[name]
        return conv3x3_bias_act(x, w, b, act)

    x = jnp.transpose(x_nchw, (0, 2, 3, 1)).astype(jnp.float32)   # NCHW -> NHWC
    x = local_response_norm(x, size=3)

    # Encoder
    x = cbr(x, "En11"); x = cbr(x, "En12")
    x, i1 = maxpool2x2(x)
    x = cbr(x, "En21"); x = cbr(x, "En22")
    x, i2 = maxpool2x2(x)
    x = cbr(x, "En31"); x = cbr(x, "En32"); x = cbr(x, "En33")
    x, i3 = maxpool2x2(x)
    x = cbr(x, "En41"); x = cbr(x, "En42"); x = cbr(x, "En43")
    x, i4 = maxpool2x2(x)
    x = cbr(x, "En51"); x = cbr(x, "En52"); x = cbr(x, "En53")
    x, i5 = maxpool2x2(x)

    # Decoder
    x = maxunpool2x2(x, i5)
    x = cbr(x, "De53"); x = cbr(x, "De52"); x = cbr(x, "De51")
    x = maxunpool2x2(x, i4)
    x = cbr(x, "De43"); x = cbr(x, "De42"); x = cbr(x, "De41")
    x = maxunpool2x2(x, i3)
    x = cbr(x, "De33"); x = cbr(x, "De32"); x = cbr(x, "De31")
    x = maxunpool2x2(x, i2)
    x = cbr(x, "De22"); x = cbr(x, "De21")
    x = maxunpool2x2(x, i1)
    x = cbr(x, "De12")
    featmap = x
    probs = cbr(x, "De11", act="sigmoid")

    # Back to NCHW (f32) to match the PyTorch return convention.
    return (jnp.transpose(featmap, (0, 3, 1, 2)).astype(jnp.float32),
            jnp.transpose(probs, (0, 3, 1, 2)).astype(jnp.float32))


# --------------------------------------------------------------------------
def _check_conv(key, cin, cout, h, w):
    """Validate one Pallas conv path against an f32 XLA reference."""
    kx, kw, kb = jax.random.split(key, 3)
    xt = jax.random.normal(kx, (2, h, w, cin), jnp.float32)
    wt = jax.random.uniform(kw, (3, 3, cin, cout), jnp.float32, -0.05, 0.05)
    bt = jax.random.uniform(kb, (cout,), jnp.float32, -0.05, 0.05)
    got = conv3x3_bias_act(xt, wt, bt, "relu").astype(jnp.float32)
    ref = jax.lax.conv_general_dilated(
        xt, wt, (1, 1), "SAME",
        dimension_numbers=("NHWC", "HWIO", "NHWC")) + bt
    ref = jnp.maximum(ref, 0.0)
    err = float(jnp.max(jnp.abs(got - ref)))
    tol = 1e-2 + 5e-2 * float(jnp.max(jnp.abs(ref)))   # bf16 operand tolerance
    assert err < tol, (cin, cout, h, w, err, tol)


if __name__ == "__main__":
    in_chn, out_chn = 3, 1
    N, H, W = 2, 32, 32          # 32x32 so 5 levels of 2x2 pooling are valid

    root = jax.random.PRNGKey(0)
    k_x, k_p, k_t = jax.random.split(root, 3)
    x = jax.random.normal(k_x, (N, in_chn, H, W), jnp.float32)
    params = init_params(k_p, in_chn, out_chn)

    # Numerical sanity checks covering both Pallas conv paths.
    k1, k2, k3 = jax.random.split(k_t, 3)
    _check_conv(k1, 64, 128, 16, 16)    # Path B: dx-fold, 3 aligned dy matmuls
    _check_conv(k2, 256, 256, 8, 8)     # Path A: long-K single matmul
    _check_conv(k3, 3, 64, 16, 16)      # Path A: Cin=3, K padded 27 -> 32

    fwd = jax.jit(segnet_forward)
    featmap, probs = fwd(x, params)
    jax.block_until_ready((featmap, probs))

    assert featmap.shape == (N, 64, H, W) and featmap.dtype == jnp.float32
    assert probs.shape == (N, out_chn, H, W) and probs.dtype == jnp.float32
    assert bool(jnp.all(probs >= 0.0) & jnp.all(probs <= 1.0))

    print("KERNEL_OK")
</pallas_src>

<mosaic_0001>
module attributes {stable_mosaic.version = 11 : i64} {
  func.func @_conv_dyfold_kernel(%arg0: i32, %arg1: i32, %arg2: memref<1x1x288x192xbf16, #tpu.memory_space<vmem>>, %arg3: memref<3x192x128xbf16, #tpu.memory_space<vmem>>, %arg4: memref<1x128xf32, #tpu.memory_space<vmem>>, %arg5: memref<1x1x256x128xbf16, #tpu.memory_space<vmem>>, %arg6: memref<256x128xf32, #tpu.memory_space<vmem>>) attributes {dimension_semantics = [#tpu.dimension_semantics<parallel>, #tpu.dimension_semantics<parallel>], iteration_bounds = array<i64: 2, 1>, scalar_prefetch = 0 : i64, scratch_operands = 1 : i64, tpu.core_type = #tpu.core_type<tc>, window_params = [{transform_indices = @transform_0, window_bounds = array<i64: 1, 1, 288, 192>}, {pipeline_mode = #tpu.pipeline_mode<synchronous>, transform_indices = @transform_1, window_bounds = array<i64: 3, 192, 128>}, {pipeline_mode = #tpu.pipeline_mode<synchronous>, transform_indices = @transform_2, window_bounds = array<i64: 1, 128>}, {transform_indices = @transform_3, window_bounds = array<i64: 1, 1, 256, 128>}]} {
    %c0 = arith.constant 0 : index
    %c0_0 = arith.constant 0 : index
    %c0_1 = arith.constant 0 : index
    %c0_2 = arith.constant 0 : index
    %0 = vector.load %arg2[%c0, %c0_0, %c0_1, %c0_2] : memref<1x1x288x192xbf16, #tpu.memory_space<vmem>>, vector<1x1x256x192xbf16>
    %1 = vector.shape_cast %0 : vector<1x1x256x192xbf16> to vector<256x192xbf16>
    %c0_3 = arith.constant 0 : index
    %c0_4 = arith.constant 0 : index
    %c0_5 = arith.constant 0 : index
    %2 = vector.load %arg3[%c0_3, %c0_4, %c0_5] : memref<3x192x128xbf16, #tpu.memory_space<vmem>>, vector<1x192x128xbf16>
    %3 = vector.shape_cast %2 : vector<1x192x128xbf16> to vector<192x128xbf16>
    %cst = arith.constant dense<0.000000e+00> : vector<256x128xf32>
    %4 = tpu.matmul %1, %3, %cst {dimension_numbers = #tpu.dot_dimension_numbers<[1], [0], [0], [1], [0, 0, 1, 1], [], []>} : vector<256x192xbf16>, vector<192x128xbf16>, vector<256x128xf32> -> vector<256x128xf32>
    %c0_6 = arith.constant 0 : index
    %c0_7 = arith.constant 0 : index
    %5 = vector.load %arg6[%c0_6, %c0_7] : memref<256x128xf32, #tpu.memory_space<vmem>>, vector<256x128xf32>
    tpu.vector_store %arg6[%c0_6, %c0_7], %4 {strides = array<i32>} : memref<256x128xf32, #tpu.memory_space<vmem>>, vector<256x128xf32>,
    %c0_8 = arith.constant 0 : index
    %c0_9 = arith.constant 0 : index
    %6 = vector.load %arg6[%c0_8, %c0_9] : memref<256x128xf32, #tpu.memory_space<vmem>>, vector<256x128xf32>
    %c0_10 = arith.constant 0 : index
    %c0_11 = arith.constant 0 : index
    %c16 = arith.constant 16 : index
    %c0_12 = arith.constant 0 : index
    %7 = vector.load %arg2[%c0_10, %c0_11, %c16, %c0_12] : memref<1x1x288x192xbf16, #tpu.memory_space<vmem>>, vector<1x1x256x192xbf16>
    %8 = vector.shape_cast %7 : vector<1x1x256x192xbf16> to vector<256x192xbf16>
    %c1 = arith.constant 1 : index
    %c0_13 = arith.constant 0 : index
    %c0_14 = arith.constant 0 : index
    %9 = vector.load %arg3[%c1, %c0_13, %c0_14] : memref<3x192x128xbf16, #tpu.memory_space<vmem>>, vector<1x192x128xbf16>
    %10 = vector.shape_cast %9 : vector<1x192x128xbf16> to vector<192x128xbf16>
    %cst_15 = arith.constant dense<0.000000e+00> : vector<256x128xf32>
    %11 = tpu.matmul %8, %10, %cst_15 {dimension_numbers = #tpu.dot_dimension_numbers<[1], [0], [0], [1], [0, 0, 1, 1], [], []>} : vector<256x192xbf16>, vector<192x128xbf16>, vector<256x128xf32> -> vector<256x128xf32>
    %12 = arith.addf %6, %11 : vector<256x128xf32>
    %c0_16 = arith.constant 0 : index
    %c0_17 = arith.constant 0 : index
    %13 = vector.load %arg6[%c0_16, %c0_17] : memref<256x128xf32, #tpu.memory_space<vmem>>, vector<256x128xf32>
    tpu.vector_store %arg6[%c0_16, %c0_17], %12 {strides = array<i32>} : memref<256x128xf32, #tpu.memory_space<vmem>>, vector<256x128xf32>,
    %c0_18 = arith.constant 0 : index
    %c0_19 = arith.constant 0 : index
    %14 = vector.load %arg6[%c0_18, %c0_19] : memref<256x128xf32, #tpu.memory_space<vmem>>, vector<256x128xf32>
    %c0_20 = arith.constant 0 : index
    %c0_21 = arith.constant 0 : index
    %c32 = arith.constant 32 : index
    %c0_22 = arith.constant 0 : index
    %15 = vector.load %arg2[%c0_20, %c0_21, %c32, %c0_22] : memref<1x1x288x192xbf16, #tpu.memory_space<vmem>>, vector<1x1x256x192xbf16>
    %16 = vector.shape_cast %15 : vector<1x1x256x192xbf16> to vector<256x192xbf16>
    %c2 = arith.constant 2 : index
    %c0_23 = arith.constant 0 : index
    %c0_24 = arith.constant 0 : index
    %17 = vector.load %arg3[%c2, %c0_23, %c0_24] : memref<3x192x128xbf16, #tpu.memory_space<vmem>>, vector<1x192x128xbf16>
    %18 = vector.shape_cast %17 : vector<1x192x128xbf16> to vector<192x128xbf16>
    %cst_25 = arith.constant dense<0.000000e+00> : vector<256x128xf32>
    %19 = tpu.matmul %16, %18, %cst_25 {dimension_numbers = #tpu.dot_dimension_numbers<[1], [0], [0], [1], [0, 0, 1, 1], [], []>} : vector<256x192xbf16>, vector<192x128xbf16>, vector<256x128xf32> -> vector<256x128xf32>
    %20 = arith.addf %14, %19 : vector<256x128xf32>
    %c0_26 = arith.constant 0 : index
    %c0_27 = arith.constant 0 : index
    %21 = vector.load %arg6[%c0_26, %c0_27] : memref<256x128xf32, #tpu.memory_space<vmem>>, vector<256x128xf32>
    tpu.vector_store %arg6[%c0_26, %c0_27], %20 {strides = array<i32>} : memref<256x128xf32, #tpu.memory_space<vmem>>, vector<256x128xf32>,
    %c0_28 = arith.constant 0 : index
    %c0_29 = arith.constant 0 : index
    %22 = vector.load %arg6[%c0_28, %c0_29] : memref<256x128xf32, #tpu.memory_space<vmem>>, vector<256x128xf32>
    %c0_30 = arith.constant 0 : index
    %c0_31 = arith.constant 0 : index
    %23 = vector.load %arg4[%c0_30, %c0_31] : memref<1x128xf32, #tpu.memory_space<vmem>>, vector<1x128xf32>
    %24 = vector.broadcast %23 : vector<1x128xf32> to vector<256x128xf32>
    %25 = arith.addf %22, %24 : vector<256x128xf32>
    %cst_32 = arith.constant 0.000000e+00 : f32
    %26 = vector.broadcast %cst_32 : f32 to vector<256x128xf32>
    %27 = arith.maximumf %25, %26 : vector<256x128xf32>
    %28 = arith.truncf %27 : vector<256x128xf32> to vector<256x128xbf16>
    %c0_33 = arith.constant 0 : index
    %c0_34 = arith.constant 0 : index
    %c0_35 = arith.constant 0 : index
    %c0_36 = arith.constant 0 : index
    %29 = vector.load %arg5[%c0_33, %c0_34, %c0_35, %c0_36] : memref<1x1x256x128xbf16, #tpu.memory_space<vmem>>, vector<1x1x256x128xbf16>
    %30 = vector.shape_cast %29 : vector<1x1x256x128xbf16> to vector<256x128xbf16>
    %31 = vector.shape_cast %28 : vector<256x128xbf16> to vector<1x1x256x128xbf16>
    tpu.vector_store %arg5[%c0_33, %c0_34, %c0_35, %c0_36], %31 {strides = array<i32>} : memref<1x1x256x128xbf16, #tpu.memory_space<vmem>>, vector<1x1x256x128xbf16>,
    return
  }
  func.func @transform_0(%arg0: i32, %arg1: i32) -> (i32, i32, i32, i32) {
    %c0_i32 = arith.constant 0 : i32
    %c0_i32_0 = arith.constant 0 : i32
    %c0_i32_1 = arith.constant 0 : i32
    return %arg0, %arg1, %c0_i32, %c0_i32_0 : i32, i32, i32, i32
  }
  func.func @transform_1(%arg0: i32, %arg1: i32) -> (i32, i32, i32) {
    %c0_i32 = arith.constant 0 : i32
    %c0_i32_0 = arith.constant 0 : i32
    %c0_i32_1 = arith.constant 0 : i32
    %c0_i32_2 = arith.constant 0 : i32
    return %c0_i32, %c0_i32_0, %c0_i32_1 : i32, i32, i32
  }
  func.func @transform_2(%arg0: i32, %arg1: i32) -> (i32, i32) {
    %c0_i32 = arith.constant 0 : i32
    %c0_i32_0 = arith.constant 0 : i32
    %c0_i32_1 = arith.constant 0 : i32
    return %c0_i32, %c0_i32_0 : i32, i32
  }
  func.func @transform_3(%arg0: i32, %arg1: i32) -> (i32, i32, i32, i32) {
    %c0_i32 = arith.constant 0 : i32
    %c0_i32_0 = arith.constant 0 : i32
    %c0_i32_1 = arith.constant 0 : i32
    return %arg0, %arg1, %c0_i32, %c0_i32_0 : i32, i32, i32, i32
  }
}

</mosaic_0001>

<bundles_post_ra>
// kernel: tpu_custom_call.1
= control target key start
LH: loop header
LB: loop body
LE: loop exit
PB: predicated region body
PF: predicated region fallthrough
CT: control target
= control target key end

     0   :  { %8 = vsyncpa [#allocation4], 0  ;;  %s4073_s0 = inlined_call_operand.hbm [shape: bf16[2,1,288,192], index: 0, kind: input, shape index: {}]   ;;  %s4074_s1 = inlined_call_operand.hbm [shape: bf16[3,192,128], index: 1, kind: input, shape index: {}]   ;;  %s4075_s2 = inlined_call_operand.vmem [shape: f32[1,128], index: 2, kind: input, shape index: {}]   ;;  %s4076_s3 = inlined_call_operand.hbm [shape: bf16[2,1,256,128], index: 3, kind: output, shape index: {}]  }
   0x1   :  { %10 = vsyncpa [#allocation4 + $0x1], 0 }
   0x2   :  { %11 = vsyncpa [#allocation7], 0 }
   0x3   :  { %12 = vsyncpa [#allocation5], 0 }
   0x4   :  { %14 = vsyncpa [#allocation5 + $0x1], 0  ;;  %s3311_s12 = smov 0   ;;  %s3313_s13 = smov 0  }
   0x5   :  { %s3315_s14 = smov 0   ;;  %s3317_s15 = smov 0  }
   0x6   :  { %s3319_s16 = smov 0   ;;  %s3321_s17 = smov 0  }
   0x7 LB: > { %s2227_s18 = sadd.s32 4294967295, %s3282_s17   ;;  %s2228_s19 = sadd.s32 4294967294, %s3282_s17   ;;  %s3282_s17 = sphi %s3321_s17, %s20_s17   ;;  %s3278_s16 = sphi %s3319_s16, %s4127_s16   ;;  %s3274_s15 = sphi %s3317_s15, %s4126_s15   ;;  %s3270_s14 = sphi %s3315_s14, %s4125_s14   ;;  %s3266_s13 = sphi %s3313_s13, %s4124_s13   ;;  %s3262_s12 = sphi %s3311_s12, %s4123_s12  }
   0x8   : > { %p54_p0 = scmp.ne.s32.totalorder %s3266_s13, %s3262_s12  ;;  %p3345_p1 = scmp.eq.s32.totalorder %s2227_s18, 0 }
   0x9   : > { %p3349_p2 = scmp.eq.s32.totalorder %s2227_s18, 1  ;;  %p128_p3 = scmp.eq.s32.totalorder %s2228_s19, 1 }
   0xa   : > { %p3355_p4 = por %p3345_p1, %p54_p0  ;;  %p2229_p5 = scmp.ge.s32.totalorder %s3282_s17, 1 }
   0xb   : > { %p3360_p6 = por %p128_p3, %p54_p0  ;;  %p135_p7 = scmp.lt.s32.totalorder %s3282_s17, 3 }
   0xc   : > { %s146_s26 = sshll.u32 %s4074_s1, 4  ;;  %s3284_s28 = smov [#allocation6]   ;;  %s147_s26 = int_to_ptr.hbm [resolvable:$true] %s146_s26 }
   0xd   : > { %p3368_p8 = pnand %p2229_p5, %p135_p7  ;;  %s148_s29 = sshll.u32 %s3284_s28, 4  ;;  %s149_s29 = int_to_ptr.vmem [resolvable:$true] %s148_s29 }
   0xe   : > { %p2231_p11 = scmp.ge.s32.totalorder %s3282_s17, 2  ;;  %s3285_s30 = smov 64  }
   0xf   : > { %p3064_p9 = pneg %p3368_p8  ;;  %s3286_s4 = smov 4  }
  0x10   : > { %s32_s5 = sadd.s32 1, %s3278_s16  ;;  %s41_s6 = sadd.s32 1, %s3270_s14 }
  0x11   : > { %p3065_p10 = pnand %p3064_p9, %p3345_p1  ;;  %p34_p12 = scmp.ge.s32.totalorder %s32_s5, 2 }
  0x12   : > { %p48_p13 = scmp.ne.s32.totalorder %s3270_s14, %s3266_s13  ;;  %p49_p0 = scmp.eq.s32.totalorder %s3282_s17, 0 }
  0x13   : > { %3067 = dma.hbm_to_vmem [thread:$0]  (!%p3065_p10), %s147_s26, 4608, %s149_s29, [#allocation7], %s3285_s30, %s3285_s30, %s3286_s4  }
  0x14   : > { %s4129_s5 = smov (%p34_p12, %s32_s5), 0  ;;  %p50_p3 = por %p49_p0, %p48_p13 }
  0x15   : > { %p3386_p5 = por %p3349_p2, %p48_p13  ;;  %s36_s8 = ssub.s32 %s3278_s16, %s4129_s5 }
  0x16   : > { %p3077_p7 = scmp.lt.s32.totalorder %s3282_s17, 2  ;;  %p39_p9 = scmp.eq.s32.totalorder %s36_s8, 0 }
  0x17   : > { %s165_s9 = sand.u32 1, %s3270_s14   ;;  %s3054_s18 = smul.u32 288, %s3278_s16 }
  0x18   : > { %s3053_s10 = smul.u32 288, %s165_s9  ;;  %p3069_p10 = pnand %p3077_p7, %p50_p3 }
  0x19   : > { %s3395_s11 = scalar_select %p39_p9, %s3270_s14, %s41_s6  }
  0x1a   : > { %s169_s19 = scalar_lea.vmem [#allocation3], %s3053_s10  ;;  %s176_s28 = scalar_lea.hbm %s4073_s0, %s3054_s18 }
  0x1b   : > { %s179_s24 = sshll.u32 %s169_s19, 4  ;;  %s177_s21 = sshll.u32 %s176_s28, 4  ;;  %s180_s24 = int_to_ptr.vmem [resolvable:$true] %s179_s24  ;;  %s178_s21 = int_to_ptr.hbm [resolvable:$true] %s177_s21 }
  0x1c   : > { %s166_s29 = scalar_lea.sflag [#allocation4], %s165_s9  ;;  %s3287_s30 = smov 128  }
  0x1d   : > { %s3288_s4 = smov 8   ;;  %191 = sbr.rel (%p3368_p8) target bundleno = 598 (0x256), region = 32 }
  0x1e   : > { %3071 = dma.hbm_to_vmem [thread:$0]  (!%p3069_p10), %s178_s21, 4608, %s180_s24, %s166_s29, %s3287_s30, %s3287_s30, %s3288_s4  }
  0x22   : > { %s3404_s6 = sand.u32 1, %s3266_s13  }
  0x23   : > { %s3055_s8 = smul.u32 288, %s3404_s6  ;;  %s194_s10 = scalar_lea.sflag [#allocation4], %s3404_s6 }
  0x25   : > { %s3408_s19 = scalar_lea.vmem [#allocation3], %s3055_s8 }
  0x26   : > { %3249 = dma.done.wait (%p3355_p4), %s194_s10, 4608  }
  0x27   : > { %3251 = vsyncadd (%p3355_p4), %s194_s10, 4294962688 }
  0x28   : > { %3253 = dma.done.wait (%p3345_p1), [#allocation7], 4608  }
  0x29   : > { %3255 = vsyncadd (%p3345_p1), [#allocation7], 4294962688  ;;  %v2856_v0 = vld [vmem:[#allocation6 + $0x38] sm:$0xff]  ;;  %v2855_v4 = vld [vmem:[#allocation6 + $0x30] sm:$0xff]  ;;  %vm499_vm0 = vcmask 523264   ;;  %s2235_s27 = sshll.u32 %s3404_s6, 7 }
  0x2a   : > { %v3418_v1 = vld [vmem:[#allocation6 + $0x58] sm:$0xff]  ;;  %548 = vmatpush.bf16.msra.mxu0 %v2856_v0  ;;  %v3423_v5 = vld [vmem:[#allocation6 + $0x50] sm:$0xff]  ;;  %v2854_v8 = vld [vmem:[#allocation6 + $0x28] sm:$0xff]  ;;  %s3929_s9 = scalar_lea.vmem [#allocation8], %s2235_s27  ;;  %s2949_s18 = sshll.u32 %s3274_s15, 7 }
  0x2b   : > { %v2900_v2 = vld [vmem:[#allocation6 + $0x98] sm:$0xff]  ;;  %3045 = vmatpush.bf16.msra.mxu1 %v3418_v1  ;;  %v2899_v6 = vld [vmem:[#allocation6 + $0x90] sm:$0xff]  ;;  %v3429_v9 = vld [vmem:[#allocation6 + $0x48] sm:$0xff]  ;;  %s2126_s26 = scalar_lea.hbm %s4076_s3, %s2949_s18  ;;  %s2127_s28 = sshll.u32 %s3929_s9, 4  ;;  %s2128_s28 = int_to_ptr.vmem [resolvable:$true] %s2127_s28 }
  0x2c   : > { %v3420_v3 = vld [vmem:[#allocation6 + $0xb8] sm:$0xff]  ;;  %1111 = vmatpush.bf16.msra.mxu2 %v2900_v2  ;;  %v3426_v7 = vld [vmem:[#allocation6 + $0xb0] sm:$0xff]  ;;  %v2898_v10 = vld [vmem:[#allocation6 + $0x88] sm:$0xff]  ;;  %s2129_s21 = sshll.u32 %s2126_s26, 4  ;;  %s2113_s15 = scalar_lea.sflag [#allocation5], %s3404_s6  ;;  %s2130_s21 = int_to_ptr.hbm [resolvable:$true] %s2129_s21 }
  0x2d   : > { %3049 = vmatpush.bf16.msra.mxu3 %v3420_v3  ;;  %v3432_v11 = vld [vmem:[#allocation6 + $0xa8] sm:$0xff]  ;;  %v2853_v12 = vld [vmem:[#allocation6 + $0x20] sm:$0xff]  ;;  %v2831_v15 = vld [vmem:[%s3408_s19 + $0x74] sm:$0xf]  ;;  %s3210_s29 = sshra.s32 %s2130_s21, 4  ;;  %s3216_s10 = scalar_lea.hbm %s4076_s3, 256  ;;  %s3211_s29 = int_to_ptr.hbm [resolvable:$true] %s3210_s29 }
  0x2e   : > { %549 = vmatpush.bf16.msra.mxu0 %v2855_v4  ;;  %v3434_v13 = vld [vmem:[#allocation6 + $0x40] sm:$0xff]  ;;  %v2296_v16 = vld [vmem:[%s3408_s19 + $0x78] sm:$0xf0]  ;;  %v2488_v19 = vld [vmem:[%s3408_s19 + $0x88] sm:$0xf0]  ;;  %s3212_s30 = scalar_lea.hbm %s3211_s29, 128  ;;  %p3217_p8 = scmp.lt.s32.totalorder %s3211_s29, %s4076_s3 }
  0x2f   : > { %3046 = vmatpush.bf16.msra.mxu1 %v3423_v5  ;;  %v2897_v14 = vld [vmem:[#allocation6 + $0x80] sm:$0xff]  ;;  %v2948_v20 = vld [vmem:[#allocation6 + $0x118] sm:$0xff]  ;;  %v2299_v22 = vor.u32 %v2831_v15, %v2296_v16  ;;  %v2943_v26 = vld [vmem:[#allocation6 + $0xf0] sm:$0xff]  ;;  %p3213_p1 = scmp.ne.s32.totalorder %s3211_s29, %s3212_s30  ;;  %p3218_p12 = scmp.lt.s32.totalorder %s3216_s10, %s3212_s30 }
  0x30   : > { %1112 = vmatpush.bf16.msra.mxu2 %v2899_v6  ;;  %v3440_v17 = vld [vmem:[#allocation6 + $0xa0] sm:$0xff]  ;;  %v2944_v21 = vld [vmem:[#allocation6 + $0xf8] sm:$0xff]  ;;  %v2851_v27 = vld [vmem:[#allocation6 + $0x10] sm:$0xff] }
  0x31   : > { %3050 = vmatpush.bf16.msra.mxu3 %v3426_v7  ;;  %v2875_v18 = vld [vmem:[%s3408_s19 + $0x84] sm:$0xf]  ;;  %v2852_v24 = vld [vmem:[#allocation6 + $0x18] sm:$0xff]  ;;  %v2947_v28 = vld [vmem:[#allocation6 + $0x110] sm:$0xff]  ;;  %p3214_p2 = pnand %p3213_p1, %p3386_p5  ;;  %p3219_p13 = por %p3218_p12, %p3217_p8 }
  0x32   : > { %550 = vmatpush.bf16.msra.mxu0 %v2854_v8  ;;  %v2491_v23 = vor.u32 %v2875_v18, %v2488_v19  ;;  %v2896_v25 = vld [vmem:[#allocation6 + $0x78] sm:$0xff]  ;;  %v2895_v29 = vld [vmem:[#allocation6 + $0x70] sm:$0xff]  ;;  %v2942_v30 = vld [vmem:[#allocation6 + $0xe8] sm:$0xff] }
  0x33   : > { %3047 = vmatpush.bf16.msra.mxu1 %v3429_v9  ;;  %v2850_v31 = vld [vmem:[#allocation6 + $0x8] sm:$0xff]  ;;  %v2849_v33 = vld [vmem:[#allocation6] sm:$0xff]  ;;  %v2430_v39 = vld [vmem:[%s3408_s19 + $0x10] sm:$0xf]  ;;  %p3215_p4 = pneg %p3214_p2 }
  0x34   : > { %1113 = vmatpush.bf16.msra.mxu2 %v2898_v10  ;;  %v2894_v32 = vld [vmem:[#allocation6 + $0x68] sm:$0xff]  ;;  %v2893_v34 = vld [vmem:[#allocation6 + $0x60] sm:$0xff]  ;;  %v2862_v40 = vld [vmem:[%s3408_s19 + $0x14] sm:$0xf0] }
  0x35   : > { %3051 = vmatpush.bf16.msra.mxu3 %v3432_v11  ;;  %v2238_v35 = vld [vmem:[%s3408_s19] sm:$0xf]  ;;  %v2818_v36 = vld [vmem:[%s3408_s19 + $0x4] sm:$0xf0]  ;;  %v2833_v37 = vld [vmem:[%s3408_s19 + $0x84] sm:$0xf]  ;;  %v2431_v45 = vor.u32 %v2862_v40, %v2430_v39  ;;  %p3220_p0 = pnand %p3219_p13, %p3215_p4 }
  0x36   : > { %551 = vmatpush.bf16.msra.mxu0 %v2853_v12  ;;  %v2304_v38 = vld [vmem:[%s3408_s19 + $0x88] sm:$0xf0]  ;;  %v2877_v41 = vld [vmem:[%s3408_s19 + $0x94] sm:$0xf]  ;;  %v2496_v42 = vld [vmem:[%s3408_s19 + $0x98] sm:$0xf0]  ;;  %v2239_v43 = vor.u32 %v2818_v36, %v2238_v35 }
  0x37   : > { %3048 = vmatpush.bf16.msra.mxu1 %v3434_v13  ;;  %v2307_v44 = vor.u32 %v2833_v37, %v2304_v38  ;;  %v2499_v46 = vor.u32 %v2877_v41, %v2496_v42  ;;  %v2941_v47 = vld [vmem:[#allocation6 + $0xe0] sm:$0xff]  ;;  %v2246_v48 = vld [vmem:[%s3408_s19 + $0x10] sm:$0xf]  ;;  %v2820_v49 = vld [vmem:[%s3408_s19 + $0x14] sm:$0xf0] }
  0x38   : > { %1114 = vmatpush.bf16.msra.mxu2 %v2897_v14  ;;  %v2835_v50 = vld [vmem:[%s3408_s19 + $0x94] sm:$0xf]  ;;  %v2312_v51 = vld [vmem:[%s3408_s19 + $0x98] sm:$0xf0]  ;;  %v2438_v52 = vld [vmem:[%s3408_s19 + $0x20] sm:$0xf]  ;;  %v2247_v56 = vor.u32 %v2820_v49, %v2246_v48 }
  0x39   : > { %3052 = vmatpush.bf16.msra.mxu3 %v3440_v17  ;;  %v2864_v53 = vld [vmem:[%s3408_s19 + $0x24] sm:$0xf0]  ;;  %v2879_v54 = vld [vmem:[%s3408_s19 + $0xa4] sm:$0xf]  ;;  %v2504_v55 = vld [vmem:[%s3408_s19 + $0xa8] sm:$0xf0]  ;;  %v2315_v57 = vor.u32 %v2835_v50, %v2312_v51 }
  0x3a   : > { %2419 = vmatmul.msk.bf16.vlgmr.msra.gmra.mxu1 %vm499_vm0, %v2299_v22  ;;  %552 = vmatpush.bf16.msra.mxu0 %v2852_v24  ;;  %v2439_v58 = vor.u32 %v2864_v53, %v2438_v52  ;;  %v2507_v59 = vor.u32 %v2879_v54, %v2504_v55  ;;  %v2946_v60 = vld [vmem:[#allocation6 + $0x108] sm:$0xff]  ;;  %v2940_v61 = vld [vmem:[#allocation6 + $0xd8] sm:$0xff]  ;;  %v2254_v62 = vld [vmem:[%s3408_s19 + $0x20] sm:$0xf] }
  0x3b   : > { %1706 = vmatpush.bf16.msrb.mxu1 %v2944_v21  ;;  %v2822_v63 = vld [vmem:[%s3408_s19 + $0x24] sm:$0xf0]  ;;  %v2837_v0 = vld [vmem:[%s3408_s19 + $0xa4] sm:$0xf]  ;;  %v2446_v2 = vld [vmem:[%s3408_s19 + $0x30] sm:$0xf] }
  0x3c   : > { %2611 = vmatmul.msk.bf16.vlgmr.msra.gmra.mxu3 %vm499_vm0, %v2491_v23  ;;  %1115 = vmatpush.bf16.msra.mxu2 %v2896_v25  ;;  %v2881_v4 = vld [vmem:[%s3408_s19 + $0xb4] sm:$0xf]  ;;  %v2255_v6 = vor.u32 %v2822_v63, %v2254_v62  ;;  %v2262_v10 = vld [vmem:[%s3408_s19 + $0x30] sm:$0xf]  ;;  %v2454_v14 = vld [vmem:[%s3408_s19 + $0x40] sm:$0xf] }
  0x3d   : > { %1799 = vmatpush.bf16.msrb.mxu3 %v2948_v20  ;;  %v2839_v12 = vld [vmem:[%s3408_s19 + $0xb4] sm:$0xf]  ;;  %v2868_v15 = vld [vmem:[%s3408_s19 + $0x44] sm:$0xf0]  ;;  %v2883_v16 = vld [vmem:[%s3408_s19 + $0xc4] sm:$0xf] }
  0x3e   : > { %553 = vmatpush.bf16.msra.mxu0 %v2851_v27  ;;  %v2455_v20 = vor.u32 %v2868_v15, %v2454_v14  ;;  %v2939_v22 = vld [vmem:[#allocation6 + $0xd0] sm:$0xff]  ;;  %v2945_v23 = vld [vmem:[#allocation6 + $0x100] sm:$0xff]  ;;  %v2826_v25 = vld [vmem:[%s3408_s19 + $0x44] sm:$0xf0] }
  0x3f   : > { %1707 = vmatpush.bf16.msrb.mxu1 %v2943_v26  ;;  %v2270_v24 = vld [vmem:[%s3408_s19 + $0x40] sm:$0xf]  ;;  %v2841_v26 = vld [vmem:[%s3408_s19 + $0xc4] sm:$0xf]  ;;  %v2336_v27 = vld [vmem:[%s3408_s19 + $0xc8] sm:$0xf0] }
  0x40   : > { %1116 = vmatpush.bf16.msra.mxu2 %v2895_v29  ;;  %v2870_v29 = vld [vmem:[%s3408_s19 + $0x54] sm:$0xf0]  ;;  %v2938_v36 = vld [vmem:[#allocation6 + $0xc8] sm:$0xff]  ;;  %v2278_v37 = vld [vmem:[%s3408_s19 + $0x50] sm:$0xf] }
  0x41   : > { %1800 = vmatpush.bf16.msrb.mxu3 %v2947_v28  ;;  %v2462_v28 = vld [vmem:[%s3408_s19 + $0x50] sm:$0xf]  ;;  %v2828_v38 = vld [vmem:[%s3408_s19 + $0x54] sm:$0xf0]  ;;  %v2843_v39 = vld [vmem:[%s3408_s19 + $0xd4] sm:$0xf] }
  0x42   : > { %554 = vmatpush.bf16.msra.mxu0 %v2850_v31  ;;  %v2528_v31 = vld [vmem:[%s3408_s19 + $0xd8] sm:$0xf0]  ;;  %v2470_v41 = vld [vmem:[%s3408_s19 + $0x60] sm:$0xf]  ;;  %v2872_v42 = vld [vmem:[%s3408_s19 + $0x64] sm:$0xf0] }
  0x43   : > { %1708 = vmatpush.bf16.msrb.mxu1 %v2942_v30  ;;  %v2885_v30 = vld [vmem:[%s3408_s19 + $0xd4] sm:$0xf]  ;;  %v2344_v40 = vld [vmem:[%s3408_s19 + $0xd8] sm:$0xf0]  ;;  %v2937_v49 = vld [vmem:[#allocation6 + $0xc0] sm:$0xff] }
  0x44   : > { %1117 = vmatpush.bf16.msra.mxu2 %v2894_v32  ;;  %v2271_v32 = vor.u32 %v2826_v25, %v2270_v24  ;;  %v2531_v35 = vor.u32 %v2885_v30, %v2528_v31  ;;  %v2286_v50 = vld [vmem:[%s3408_s19 + $0x60] sm:$0xf]  ;;  %v2830_v51 = vld [vmem:[%s3408_s19 + $0x64] sm:$0xf0]  ;;  %v2845_v52 = vld [vmem:[%s3408_s19 + $0xe4] sm:$0xf] }
  0x45   : > { %1801 = vmatpush.bf16.msrb.mxu3 %v2946_v60  ;;  %v2352_v53 = vld [vmem:[%s3408_s19 + $0xe8] sm:$0xf0]  ;;  %v2478_v54 = vld [vmem:[%s3408_s19 + $0x70] sm:$0xf]  ;;  %v2874_v55 = vld [vmem:[%s3408_s19 + $0x74] sm:$0xf0] }
  0x46   : > { %555 = vmatpush.bf16.msra.mxu0 %v2849_v33  ;;  %v2339_v33 = vor.u32 %v2841_v26, %v2336_v27  ;;  %v2479_v60 = vor.u32 %v2874_v55, %v2478_v54  ;;  %v2294_v62 = vld [vmem:[%s3408_s19 + $0x70] sm:$0xf]  ;;  %v2832_v63 = vld [vmem:[%s3408_s19 + $0x74] sm:$0xf0]  ;;  %v2834_v14 = vld [vmem:[%s3408_s19 + $0x84] sm:$0xf0] }
  0x47   : > { %1709 = vmatpush.bf16.msrb.mxu1 %v2941_v47  ;;  %v2471_v47 = vor.u32 %v2872_v42, %v2470_v41  ;;  %v2494_v15 = vld [vmem:[%s3408_s19 + $0x90] sm:$0xf]  ;;  %v2638_v55 = vld [vmem:[%s3408_s19 + $0x40] sm:$0xf] }
  0x48   : > { %1118 = vmatpush.bf16.msra.mxu2 %v2893_v34  ;;  %v2463_v34 = vor.u32 %v2870_v29, %v2462_v28  ;;  %v2510_v54 = vld [vmem:[%s3408_s19 + $0xb0] sm:$0xf] }
  0x49   : > { %556 = vmatmul.bf16.vlgmr.msra.gmra.mxu0 %v2239_v43  ;;  %1802 = vmatpush.bf16.msrb.mxu3 %v2945_v23  ;;  %v2887_v43 = vld [vmem:[%s3408_s19 + $0xe4] sm:$0xf] }
  0x4a   : > { %641 = vmatpush.bf16.msrb.mxu0 %v3418_v1  ;;  %2420 = vmatmul.msk.bf16.gmra.mxu1 %vm499_vm0, %v2307_v44  ;;  %v2320_v1 = vld [vmem:[%s3408_s19 + $0xa8] sm:$0xf0] }
  0x4b   : > { %1119 = vmatmul.bf16.vlgmr.msra.gmra.mxu2 %v2431_v45  ;;  %1710 = vmatpush.bf16.msrb.mxu1 %v2940_v61  ;;  %v2536_v44 = vld [vmem:[%s3408_s19 + $0xe8] sm:$0xf0]  ;;  %v2279_v45 = vor.u32 %v2828_v38, %v2278_v37  ;;  %v2880_v37 = vld [vmem:[%s3408_s19 + $0xa4] sm:$0xf0]  ;;  %v2907_v38 = vld [vmem:[%s3408_s19 + $0x34] sm:$0xf] }
  0x4c   : > { %1204 = vmatpush.bf16.msrb.mxu2 %v3420_v3  ;;  %2612 = vmatmul.msk.bf16.gmra.mxu3 %vm499_vm0, %v2499_v46  ;;  %v2866_v3 = vld [vmem:[%s3408_s19 + $0x34] sm:$0xf0]  ;;  %v2347_v46 = vor.u32 %v2843_v39, %v2344_v40  ;;  %v2539_v48 = vor.u32 %v2887_v43, %v2536_v44  ;;  %v2632_v39 = vld [vmem:[%s3408_s19 + $0x38] sm:$0xf0] }
  0x4d   : > { %v2447_v8 = vor.u32 %v2866_v3, %v2446_v2  ;;  %v2486_v2 = vld [vmem:[%s3408_s19 + $0x80] sm:$0xf]  ;;  %v2876_v3 = vld [vmem:[%s3408_s19 + $0x84] sm:$0xf0] }
  0x4e   : > { %642 = vmatpush.bf16.msrb.mxu0 %v3423_v5  ;;  %v2512_v5 = vld [vmem:[%s3408_s19 + $0xb8] sm:$0xf0] }
  0x4f   : > { %1711 = vmatpush.bf16.msrb.mxu1 %v2939_v22 }
  0x50   : > { %1205 = vmatpush.bf16.msrb.mxu2 %v3426_v7  ;;  %v2323_v7 = vor.u32 %v2837_v0, %v2320_v1  ;;  %v2847_v0 = vld [vmem:[%s3408_s19 + $0xf4] sm:$0xf]  ;;  %v2360_v1 = vld [vmem:[%s3408_s19 + $0xf8] sm:$0xf0] }
  0x52   : > { %643 = vmatpush.bf16.msrb.mxu0 %v3429_v9  ;;  %v2515_v9 = vor.u32 %v2881_v4, %v2512_v5  ;;  %v2891_v4 = vld [vmem:[%s3408_s19 + $0x104] sm:$0xf]  ;;  %v2552_v5 = vld [vmem:[%s3408_s19 + $0x108] sm:$0xf0] }
  0x53   : > { %1712 = vmatpush.bf16.msrb.mxu1 %v2938_v36  ;;  %v2908_v36 = vld [vmem:[%s3408_s19 + $0x34] sm:$0xf0] }
  0x54   : > { %1206 = vmatpush.bf16.msrb.mxu2 %v3432_v11  ;;  %v2824_v11 = vld [vmem:[%s3408_s19 + $0x34] sm:$0xf0] }
  0x55   : > { %v2263_v18 = vor.u32 %v2824_v11, %v2262_v10  ;;  %v2555_v10 = vor.u32 %v2891_v4, %v2552_v5 }
  0x56   : > { %644 = vmatpush.bf16.msrb.mxu0 %v3434_v13  ;;  %v2328_v13 = vld [vmem:[%s3408_s19 + $0xb8] sm:$0xf0] }
  0x57   : > { %v2331_v19 = vor.u32 %v2839_v12, %v2328_v13  ;;  %1713 = vmatpush.bf16.msrb.mxu1 %v2937_v49  ;;  %v2302_v13 = vld [vmem:[%s3408_s19 + $0x80] sm:$0xf] }
  0x58   : > { %1207 = vmatpush.bf16.msrb.mxu2 %v3440_v17  ;;  %v2520_v17 = vld [vmem:[%s3408_s19 + $0xc8] sm:$0xf0]  ;;  %v2303_v22 = vor.u32 %v2834_v14, %v2302_v13  ;;  %v2518_v13 = vld [vmem:[%s3408_s19 + $0xc0] sm:$0xf]  ;;  %v2646_v14 = vld [vmem:[%s3408_s19 + $0x50] sm:$0xf] }
  0x59   : > { %561 = vmatmul.bf16.gmra.mxu0 %v2247_v56  ;;  %v2523_v21 = vor.u32 %v2883_v16, %v2520_v17  ;;  %v2889_v56 = vld [vmem:[%s3408_s19 + $0xf4] sm:$0xf]  ;;  %v2622_v16 = vld [vmem:[%s3408_s19 + $0x20] sm:$0xf]  ;;  %v2906_v17 = vld [vmem:[%s3408_s19 + $0x24] sm:$0xf0] }
  0x5a   : > { %2421 = vmatmul.msk.bf16.gmra.mxu1 %vm499_vm0, %v2315_v57  ;;  %v2544_v57 = vld [vmem:[%s3408_s19 + $0xf8] sm:$0xf0]  ;;  %v2623_v23 = vor.u32 %v2906_v17, %v2622_v16  ;;  %v2884_v16 = vld [vmem:[%s3408_s19 + $0xc4] sm:$0xf0]  ;;  %v2911_v17 = vld [vmem:[%s3408_s19 + $0x54] sm:$0xf] }
  0x5b   : > { %1124 = vmatmul.bf16.gmra.mxu2 %v2439_v58  ;;  %v2287_v58 = vor.u32 %v2830_v51, %v2286_v50  ;;  %v2547_v61 = vor.u32 %v2889_v56, %v2544_v57  ;;  %v2910_v56 = vld [vmem:[%s3408_s19 + $0x44] sm:$0xf0]  ;;  %v2882_v57 = vld [vmem:[%s3408_s19 + $0xb4] sm:$0xf0] }
  0x5c   : > { %2613 = vmatmul.msk.bf16.gmra.mxu3 %vm499_vm0, %v2507_v59  ;;  %v2355_v59 = vor.u32 %v2845_v52, %v2352_v53  ;;  %v2318_v52 = vld [vmem:[%s3408_s19 + $0xa0] sm:$0xf]  ;;  %v2838_v53 = vld [vmem:[%s3408_s19 + $0xa4] sm:$0xf0] }
  0x69   : > { %566 = vmatmul.bf16.gmra.mxu0 %v2255_v6  ;;  %v2295_v6 = vor.u32 %v2832_v63, %v2294_v62  ;;  %v2319_v62 = vor.u32 %v2838_v53, %v2318_v52  ;;  %v2639_v63 = vor.u32 %v2910_v56, %v2638_v55  ;;  %v2913_v52 = vld [vmem:[%s3408_s19 + $0x64] sm:$0xf]  ;;  %v2656_v53 = vld [vmem:[%s3408_s19 + $0x68] sm:$0xf0] }
  0x6a   : > { %2422 = vmatmul.msk.bf16.gmra.mxu1 %vm499_vm0, %v2323_v7  ;;  %v2363_v7 = vor.u32 %v2847_v0, %v2360_v1 }
  0x6b   : > { %1129 = vmatmul.bf16.gmra.mxu2 %v2447_v8 }
  0x6c   : > { %2614 = vmatmul.msk.bf16.gmra.mxu3 %vm499_vm0, %v2515_v9  ;;  %v2487_v9 = vor.u32 %v2876_v3, %v2486_v2  ;;  %v2511_v2 = vor.u32 %v2882_v57, %v2510_v54 }
  0x79   : > { %571 = vmatmul.bf16.gmra.mxu0 %v2263_v18  ;;  %v2878_v18 = vld [vmem:[%s3408_s19 + $0x94] sm:$0xf0] }
  0x7a   : > { %2423 = vmatmul.msk.bf16.gmra.mxu1 %vm499_vm0, %v2331_v19  ;;  %v2905_v19 = vld [vmem:[%s3408_s19 + $0x24] sm:$0xf]  ;;  %v2495_v26 = vor.u32 %v2878_v18, %v2494_v15  ;;  %v2912_v15 = vld [vmem:[%s3408_s19 + $0x54] sm:$0xf0]  ;;  %v2648_v18 = vld [vmem:[%s3408_s19 + $0x58] sm:$0xf0] }
  0x7b   : > { %1134 = vmatmul.bf16.gmra.mxu2 %v2455_v20  ;;  %v2624_v20 = vld [vmem:[%s3408_s19 + $0x28] sm:$0xf0] }
  0x7c   : > { %2615 = vmatmul.msk.bf16.gmra.mxu3 %vm499_vm0, %v2523_v21  ;;  %v2627_v27 = vor.u32 %v2905_v19, %v2624_v20 }
  0x89   : > { %576 = vmatmul.bf16.gmra.mxu0 %v2271_v32  ;;  %v2310_v32 = vld [vmem:[%s3408_s19 + $0x90] sm:$0xf] }
  0x8a   : > { %2424 = vmatmul.msk.bf16.gmra.mxu1 %vm499_vm0, %v2339_v33  ;;  %v2836_v33 = vld [vmem:[%s3408_s19 + $0x94] sm:$0xf0] }
  0x8b   : > { %1139 = vmatmul.bf16.gmra.mxu2 %v2463_v34  ;;  %v2502_v34 = vld [vmem:[%s3408_s19 + $0xa0] sm:$0xf]  ;;  %v2311_v42 = vor.u32 %v2836_v33, %v2310_v32  ;;  %v2519_v32 = vor.u32 %v2884_v16, %v2518_v13  ;;  %v2651_v33 = vor.u32 %v2911_v17, %v2648_v18  ;;  %v2342_v13 = vld [vmem:[%s3408_s19 + $0xd0] sm:$0xf]  ;;  %v2916_v17 = vld [vmem:[%s3408_s19 + $0x74] sm:$0xf0] }
  0x8c   : > { %2616 = vmatmul.msk.bf16.gmra.mxu3 %vm499_vm0, %v2531_v35  ;;  %v2630_v35 = vld [vmem:[%s3408_s19 + $0x30] sm:$0xf]  ;;  %v2888_v18 = vld [vmem:[%s3408_s19 + $0xe4] sm:$0xf0] }
  0x8d   : > { %v2631_v43 = vor.u32 %v2908_v36, %v2630_v35  ;;  %v2662_v16 = vld [vmem:[%s3408_s19 + $0x70] sm:$0xf] }
  0x99   : > { %581 = vmatmul.bf16.gmra.mxu0 %v2279_v45 }
  0x9a   : > { %2425 = vmatmul.msk.bf16.gmra.mxu1 %vm499_vm0, %v2347_v46  ;;  %v2503_v46 = vor.u32 %v2880_v37, %v2502_v34 }
  0x9b   : > { %1144 = vmatmul.bf16.gmra.mxu2 %v2471_v47  ;;  %v2635_v47 = vor.u32 %v2907_v38, %v2632_v39  ;;  %v2334_v38 = vld [vmem:[%s3408_s19 + $0xc0] sm:$0xf]  ;;  %v2842_v39 = vld [vmem:[%s3408_s19 + $0xc4] sm:$0xf0] }
  0x9c   : > { %2617 = vmatmul.msk.bf16.gmra.mxu3 %vm499_vm0, %v2539_v48  ;;  %v2335_v56 = vor.u32 %v2842_v39, %v2334_v38  ;;  %v2663_v39 = vor.u32 %v2916_v17, %v2662_v16  ;;  %v2890_v16 = vld [vmem:[%s3408_s19 + $0xf4] sm:$0xf0]  ;;  %v2917_v17 = vld [vmem:[%s3408_s19 + $0x84] sm:$0xf] }
  0xa9   : > { %586 = vmatmul.bf16.gmra.mxu0 %v2287_v58  ;;  %v2909_v58 = vld [vmem:[%s3408_s19 + $0x44] sm:$0xf] }
  0xaa   : > { %2426 = vmatmul.msk.bf16.gmra.mxu1 %vm499_vm0, %v2355_v59  ;;  %v2640_v59 = vld [vmem:[%s3408_s19 + $0x48] sm:$0xf0] }
  0xab   : > { %1149 = vmatmul.bf16.gmra.mxu2 %v2479_v60  ;;  %v2643_v3 = vor.u32 %v2909_v58, %v2640_v59 }
  0xac   : > { %2618 = vmatmul.msk.bf16.gmra.mxu3 %vm499_vm0, %v2547_v61 }
  0xb7   : > { %v3534_v8 = vpop.f32.mrf.mxu1 }
  0xb9   : > { %591 = vmatmul.bf16.gmra.mxu0 %v2295_v6 }
  0xba   : > { %2427 = vmatmul.msk.bf16.gmra.mxu1 %vm499_vm0, %v2363_v7 }
  0xbb   : > { %1154 = vmatmul.bf16.gmra.mxu2 %v2487_v9  ;;  %v2326_v9 = vld [vmem:[%s3408_s19 + $0xb0] sm:$0xf] }
  0xbc   : > { %2619 = vmatmul.msk.bf16.gmra.mxu3 %vm499_vm0, %v2555_v10  ;;  %v2840_v10 = vld [vmem:[%s3408_s19 + $0xb4] sm:$0xf0] }
  0xbf   : > { %v3538_v11 = vpop.f32.mrf.mxu3  ;;  %v3540_v12 = vpop.f32.mrf.mxu1 }
  0xc6   : > { %v3552_v24 = vpop.f32.mrf.mxu0 }
  0xc7   : > { %v3550_v21 = vpop.f32.mrf.mxu3  ;;  %v3554_v25 = vpop.f32.mrf.mxu1 }
  0xc9   : > { %596 = vmatmul.bf16.gmra.mxu0 %v2303_v22  ;;  %v2327_v22 = vor.u32 %v2840_v10, %v2326_v9 }
  0xca   : > { %1714 = vmatmul.bf16.vlgmr.msrb.gmra.mxu1 %v2623_v23  ;;  %v2647_v23 = vor.u32 %v2912_v15, %v2646_v14  ;;  %v2844_v14 = vld [vmem:[%s3408_s19 + $0xd4] sm:$0xf0]  ;;  %v2534_v15 = vld [vmem:[%s3408_s19 + $0xe0] sm:$0xf] }
  0xcb   : > { %1159 = vmatmul.bf16.gmra.mxu2 %v2495_v26  ;;  %v2343_v38 = vor.u32 %v2844_v14, %v2342_v13  ;;  %v2542_v13 = vld [vmem:[%s3408_s19 + $0xf0] sm:$0xf]  ;;  %v2670_v14 = vld [vmem:[%s3408_s19 + $0x80] sm:$0xf] }
  0xcc   : > { %2796 = vmatmul.msk.bf16.vlgmr.msrb.gmra.mxu3 %vm499_vm0, %v2627_v27 }
  0xce   : > { %v3557_v28 = vpop.f32.mrf.mxu2  ;;  %v3561_v30 = vpop.f32.mrf.mxu0 }
  0xcf   : > { %v3559_v29 = vpop.f32.mrf.mxu3  ;;  %v3563_v31 = vpop.f32.mrf.mxu1 }
  0xd6   : > { %v3573_v40 = vpop.f32.mrf.mxu2  ;;  %v3577_v44 = vpop.f32.mrf.mxu0 }
  0xd7   : > { %v3575_v41 = vpop.f32.mrf.mxu3  ;;  %v3579_v45 = vpop.f32.mrf.mxu1 }
  0xd9   : > { %601 = vmatmul.bf16.gmra.mxu0 %v2311_v42  ;;  %v2526_v42 = vld [vmem:[%s3408_s19 + $0xd0] sm:$0xf] }
  0xda   : > { %1719 = vmatmul.bf16.gmra.mxu1 %v2631_v43  ;;  %v2654_v43 = vld [vmem:[%s3408_s19 + $0x60] sm:$0xf] }
  0xdb   : > { %1164 = vmatmul.bf16.gmra.mxu2 %v2503_v46  ;;  %v2914_v46 = vld [vmem:[%s3408_s19 + $0x64] sm:$0xf0] }
  0xdc   : > { %2797 = vmatmul.msk.bf16.gmra.mxu3 %vm499_vm0, %v2635_v47  ;;  %v2886_v47 = vld [vmem:[%s3408_s19 + $0xd4] sm:$0xf0]  ;;  %v2655_v57 = vor.u32 %v2914_v46, %v2654_v43  ;;  %v2535_v46 = vor.u32 %v2888_v18, %v2534_v15  ;;  %v2918_v15 = vld [vmem:[%s3408_s19 + $0x84] sm:$0xf0]  ;;  %v2672_v18 = vld [vmem:[%s3408_s19 + $0x88] sm:$0xf0] }
  0xde   : > { %v3582_v48 = vpop.f32.mrf.mxu2  ;;  %v3586_v50 = vpop.f32.mrf.mxu0 }
  0xdf   : > { %v3584_v49 = vpop.f32.mrf.mxu3  ;;  %v3588_v51 = vpop.f32.mrf.mxu1 }
  0xe6   : > { %v3598_v60 = vpop.f32.mrf.mxu2  ;;  %v3602_v0 = vpop.f32.mrf.mxu0 }
  0xe7   : > { %v3600_v61 = vpop.f32.mrf.mxu3  ;;  %4083 = vst [vmem:[#allocation12_spill] sm:$0xff] %v3602_v0  ;;  %v3604_v1 = vpop.f32.mrf.mxu1 }
  0xe9   : > { %606 = vmatmul.bf16.gmra.mxu0 %v2319_v62  ;;  %v2527_v62 = vor.u32 %v2886_v47, %v2526_v42 }
  0xea   : > { %1724 = vmatmul.bf16.gmra.mxu1 %v2639_v63  ;;  %v2659_v63 = vor.u32 %v2913_v52, %v2656_v53 }
  0xeb   : > { %1169 = vmatmul.bf16.gmra.mxu2 %v2511_v2 }
  0xec   : > { %2798 = vmatmul.msk.bf16.gmra.mxu3 %vm499_vm0, %v2643_v3 }
  0xee   : > { %v3607_v4 = vpop.f32.mrf.mxu2  ;;  %v3611_v6 = vpop.f32.mrf.mxu0 }
  0xef   : > { %4084 = vst [vmem:[#allocation13_spill] sm:$0xff] %v3607_v4  ;;  %v3609_v5 = vpop.f32.mrf.mxu3  ;;  %v3613_v7 = vpop.f32.mrf.mxu1 }
  0xf0   : > { %4085 = vst [vmem:[#allocation14_spill] sm:$0xff] %v3611_v6 }
  0xf6   : > { %v3623_v19 = vpop.f32.mrf.mxu2  ;;  %v3627_v26 = vpop.f32.mrf.mxu0 }
  0xf7   : > { %4086 = vst [vmem:[#allocation15_spill] sm:$0xff] %v3623_v19  ;;  %v3625_v20 = vpop.f32.mrf.mxu3  ;;  %v3629_v27 = vpop.f32.mrf.mxu1 }
  0xf8   : > { %4087 = vst [vmem:[#allocation16_spill] sm:$0xff] %v3627_v26 }
  0xf9   : > { %611 = vmatmul.bf16.gmra.mxu0 %v2327_v22  ;;  %v2915_v22 = vld [vmem:[%s3408_s19 + $0x74] sm:$0xf] }
  0xfa   : > { %1729 = vmatmul.bf16.gmra.mxu1 %v2647_v23  ;;  %v2664_v23 = vld [vmem:[%s3408_s19 + $0x78] sm:$0xf0] }
  0xfb   : > { %1174 = vmatmul.bf16.gmra.mxu2 %v2519_v32  ;;  %v2667_v47 = vor.u32 %v2915_v22, %v2664_v23 }
  0xfc   : > { %2799 = vmatmul.msk.bf16.gmra.mxu3 %vm499_vm0, %v2651_v33 }
  0xfe   : > { %v3632_v34 = vpop.f32.mrf.mxu2  ;;  %v3636_v36 = vpop.f32.mrf.mxu0 }
  0xff   : > { %4088 = vst [vmem:[#allocation17_spill] sm:$0xff] %v3632_v34  ;;  %v3634_v35 = vpop.f32.mrf.mxu3  ;;  %v3638_v37 = vpop.f32.mrf.mxu1 }
 0x100   : > { %4089 = vst [vmem:[#allocation18_spill] sm:$0xff] %v3636_v36 }
 0x106   : > { %v3648_v54 = vpop.f32.mrf.mxu2  ;;  %v3652_v58 = vpop.f32.mrf.mxu0 }
 0x107   : > { %4090 = vst [vmem:[#allocation19_spill] sm:$0xff] %v3648_v54  ;;  %v3650_v55 = vpop.f32.mrf.mxu3  ;;  %v3654_v59 = vpop.f32.mrf.mxu1  ;;  %v2921_v54 = vld [vmem:[%s3408_s19 + $0xa4] sm:$0xf] }
 0x108   : > { %4091 = vst [vmem:[#allocation20_spill] sm:$0xff] %v3652_v58 }
 0x109   : > { %616 = vmatmul.bf16.gmra.mxu0 %v2335_v56 }
 0x10a   : > { %1734 = vmatmul.bf16.gmra.mxu1 %v2655_v57 }
 0x10b   : > { %1179 = vmatmul.bf16.gmra.mxu2 %v2527_v62  ;;  %v2350_v62 = vld [vmem:[%s3408_s19 + $0xe0] sm:$0xf] }
 0x10c   : > { %2800 = vmatmul.msk.bf16.gmra.mxu3 %vm499_vm0, %v2659_v63  ;;  %v2846_v63 = vld [vmem:[%s3408_s19 + $0xe4] sm:$0xf0] }
 0x10e   : > { %v3657_v2 = vpop.f32.mrf.mxu2  ;;  %v3661_v9 = vpop.f32.mrf.mxu0 }
 0x10f   : > { %4092 = vst [vmem:[#allocation21_spill] sm:$0xff] %v3657_v2  ;;  %v3659_v3 = vpop.f32.mrf.mxu3  ;;  %v3663_v10 = vpop.f32.mrf.mxu1  ;;  %v2432_v2 = vld [vmem:[%s3408_s19 + $0x18] sm:$0xf0] }
 0x110   : > { %4093 = vst [vmem:[#allocation22_spill] sm:$0xff] %v3661_v9 }
 0x116   : > { %v3673_v32 = vpop.f32.mrf.mxu2  ;;  %v3677_v42 = vpop.f32.mrf.mxu0 }
 0x117   : > { %4094 = vst [vmem:[#allocation23_spill] sm:$0xff] %v3673_v32  ;;  %v3675_v33 = vpop.f32.mrf.mxu3  ;;  %v3679_v43 = vpop.f32.mrf.mxu1 }
 0x118   : > { %4095 = vst [vmem:[#allocation24_spill] sm:$0xff] %v3677_v42  ;;  %v2675_v42 = vor.u32 %v2917_v17, %v2672_v18  ;;  %v2892_v17 = vld [vmem:[%s3408_s19 + $0x104] sm:$0xf0]  ;;  %v2919_v18 = vld [vmem:[%s3408_s19 + $0x94] sm:$0xf] }
 0x119   : > { %621 = vmatmul.bf16.gmra.mxu0 %v2343_v38  ;;  %v2351_v38 = vor.u32 %v2846_v63, %v2350_v62 }
 0x11a   : > { %1739 = vmatmul.bf16.gmra.mxu1 %v2663_v39  ;;  %v2671_v39 = vor.u32 %v2918_v15, %v2670_v14  ;;  %v2358_v15 = vld [vmem:[%s3408_s19 + $0xf0] sm:$0xf] }
 0x11b   : > { %1184 = vmatmul.bf16.gmra.mxu2 %v2535_v46 }
 0x11c   : > { %2801 = vmatmul.msk.bf16.gmra.mxu3 %vm499_vm0, %v2667_v47 }
 0x11e   : > { %v3682_v52 = vpop.f32.mrf.mxu2  ;;  %v3686_v56 = vpop.f32.mrf.mxu0 }
 0x11f   : > { %4096 = vst [vmem:[#allocation25_spill] sm:$0xff] %v3682_v52  ;;  %v3684_v53 = vpop.f32.mrf.mxu3  ;;  %v3688_v57 = vpop.f32.mrf.mxu1  ;;  %v2550_v52 = vld [vmem:[%s3408_s19 + $0x100] sm:$0xf] }
 0x120   : > { %4097 = vst [vmem:[#allocation26_spill] sm:$0xff] %v3686_v56  ;;  %v2543_v56 = vor.u32 %v2890_v16, %v2542_v13  ;;  %v2678_v13 = vld [vmem:[%s3408_s19 + $0x90] sm:$0xf]  ;;  %v2920_v16 = vld [vmem:[%s3408_s19 + $0x94] sm:$0xf0]  ;;  %v2551_v9 = vor.u32 %v2892_v17, %v2550_v52 }
 0x126   : > { %v3698_v22 = vpop.f32.mrf.mxu2  ;;  %v3702_v46 = vpop.f32.mrf.mxu0 }
 0x127   : > { %4098 = vst [vmem:[#allocation27_spill] sm:$0xff] %v3698_v22  ;;  %v3700_v23 = vpop.f32.mrf.mxu3  ;;  %v3704_v47 = vpop.f32.mrf.mxu1 }
 0x128   : > { %4099 = vst [vmem:[#allocation28_spill] sm:$0xff] %v3702_v46  ;;  %v2848_v46 = vld [vmem:[%s3408_s19 + $0xf4] sm:$0xf0] }
 0x129   : > { %626 = vmatmul.bf16.gmra.mxu0 %v2351_v38  ;;  %v2680_v38 = vld [vmem:[%s3408_s19 + $0x98] sm:$0xf0] }
 0x12a   : > { %1744 = vmatmul.bf16.gmra.mxu1 %v2671_v39  ;;  %v2683_v58 = vor.u32 %v2919_v18, %v2680_v38  ;;  %v2817_v18 = vld [vmem:[%s3408_s19 + $0x4] sm:$0xf]  ;;  %v2240_v38 = vld [vmem:[%s3408_s19 + $0x8] sm:$0xf0] }
 0x12b   : > { %1189 = vmatmul.bf16.gmra.mxu2 %v2543_v56  ;;  %v2243_v34 = vor.u32 %v2817_v18, %v2240_v38  ;;  %v2819_v38 = vld [vmem:[%s3408_s19 + $0x14] sm:$0xf] }
 0x12c   : > { %2802 = vmatmul.msk.bf16.gmra.mxu3 %vm499_vm0, %v2675_v42  ;;  %v2359_v42 = vor.u32 %v2848_v46, %v2358_v15 }
 0x12e   : > { %v3707_v22 = vpop.f32.mrf.mxu2  ;;  %v3711_v63 = vpop.f32.mrf.mxu0 }
 0x12f   : > { %4100 = vst [vmem:[#allocation29_spill] sm:$0xff] %v3707_v22  ;;  %v3709_v62 = vpop.f32.mrf.mxu3  ;;  %v3713_v14 = vpop.f32.mrf.mxu1  ;;  %v2679_v22 = vor.u32 %v2920_v16, %v2678_v13 }
 0x130   : > { %4101 = vst [vmem:[#allocation30_spill] sm:$0xff] %v3711_v63 }
 0x136   : > { %v3723_v39 = vpop.f32.mrf.mxu2  ;;  %v592_v32 = vpop.f32.mrf.mxu0 }
 0x137   : > { %4102 = vst [vmem:[#allocation31_spill] sm:$0xff] %v3723_v39  ;;  %v3725_v56 = vpop.f32.mrf.mxu3  ;;  %v3727_v63 = vpop.f32.mrf.mxu1  ;;  %v682_v13 = vadd.f32 %v3534_v8, %v592_v32 }
 0x139   : > { %631 = vmatmul.bf16.gmra.mxu0 %v2359_v42  ;;  %v2686_v42 = vld [vmem:[%s3408_s19 + $0xa0] sm:$0xf] }
 0x13a   : > { %1749 = vmatmul.bf16.gmra.mxu1 %v2679_v22  ;;  %v2861_v22 = vld [vmem:[%s3408_s19 + $0x14] sm:$0xf] }
 0x13b   : > { %1194 = vmatmul.bf16.gmra.mxu2 %v2551_v9  ;;  %v2922_v9 = vld [vmem:[%s3408_s19 + $0xa4] sm:$0xf0] }
 0x13c   : > { %2803 = vmatmul.msk.bf16.gmra.mxu3 %vm499_vm0, %v2683_v58  ;;  %v2688_v58 = vld [vmem:[%s3408_s19 + $0xa8] sm:$0xf0]  ;;  %v2687_v8 = vor.u32 %v2922_v9, %v2686_v42  ;;  %v2863_v42 = vld [vmem:[%s3408_s19 + $0x24] sm:$0xf] }
 0x13d   : > { %v2691_v19 = vor.u32 %v2921_v54, %v2688_v58  ;;  %v2440_v9 = vld [vmem:[%s3408_s19 + $0x28] sm:$0xf0]  ;;  %v2694_v58 = vld [vmem:[%s3408_s19 + $0xb0] sm:$0xf] }
 0x13e   : > { %v1155_v46 = vpop.f32.mrf.mxu2  ;;  %v594_v39 = vpop.f32.mrf.mxu0 }
 0x13f   : > { %v3730_v15 = vpop.f32.mrf.mxu3  ;;  %v1245_v16 = vadd.f32 %v3538_v11, %v1155_v46  ;;  %v3734_v52 = vpop.f32.mrf.mxu1  ;;  %v684_v11 = vadd.f32 %v3540_v12, %v594_v39 }
 0x141   : > { %v3736_v17 = vadd.f32 %v1245_v16, %v682_v13  ;;  %v2435_v16 = vor.u32 %v2861_v22, %v2432_v2  ;;  %v2248_v22 = vld [vmem:[%s3408_s19 + $0x18] sm:$0xf0] }
 0x142   : > { %v2251_v0 = vor.u32 %v2819_v38, %v2248_v22 }
 0x146   : > { %v1157_v36 = vpop.f32.mrf.mxu2  ;;  %v597_v46 = vpop.f32.mrf.mxu0 }
 0x147   : > { %v3746_v26 = vpop.f32.mrf.mxu3  ;;  %v1247_v32 = vadd.f32 %v3550_v21, %v1157_v36  ;;  %v1715_v13 = vpop.f32.mrf.mxu1  ;;  %v687_v36 = vadd.f32 %v3554_v25, %v597_v46  ;;  %v2443_v25 = vor.u32 %v2863_v42, %v2440_v9  ;;  %v2821_v9 = vld [vmem:[%s3408_s19 + $0x24] sm:$0xf] }
 0x149   : > { %v3750_v6 = vadd.f32 %v1247_v32, %v684_v11  ;;  %2412 = vmatmul.msk.bf16.vlgmr.msrb.gmra.mxu0 %vm499_vm0, %v2243_v34  ;;  %v2696_v11 = vld [vmem:[%s3408_s19 + $0xb8] sm:$0xf0] }
 0x14a   : > { %1754 = vmatmul.bf16.gmra.mxu1 %v2687_v8  ;;  %v2924_v8 = vld [vmem:[%s3408_s19 + $0xb4] sm:$0xf0] }
 0x14b   : > { %2604 = vmatmul.msk.bf16.vlgmr.msrb.gmra.mxu2 %vm499_vm0, %v2435_v16  ;;  %v2695_v46 = vor.u32 %v2924_v8, %v2694_v58  ;;  %v2256_v58 = vld [vmem:[%s3408_s19 + $0x28] sm:$0xf0]  ;;  %v2865_v8 = vld [vmem:[%s3408_s19 + $0x34] sm:$0xf] }
 0x14c   : > { %2804 = vmatmul.msk.bf16.gmra.mxu3 %vm499_vm0, %v2691_v19  ;;  %v2923_v19 = vld [vmem:[%s3408_s19 + $0xb4] sm:$0xf] }
 0x14e   : > { %v1160_v12 = vpop.f32.mrf.mxu2  ;;  %v599_v39 = vpop.f32.mrf.mxu0 }
 0x14f   : > { %v1804_v21 = vpop.f32.mrf.mxu3  ;;  %v1250_v54 = vadd.f32 %v3559_v29, %v1160_v12  ;;  %v1717_v18 = vpop.f32.mrf.mxu1  ;;  %v689_v29 = vadd.f32 %v3563_v31, %v599_v39 }
 0x150   : > { %v3757_v2 = vadd.f32 %v1804_v21, %v1715_v13 }
 0x151   : > { %v3759_v34 = vadd.f32 %v1250_v54, %v687_v36  ;;  %v2699_v54 = vor.u32 %v2923_v19, %v2696_v11  ;;  %v2448_v19 = vld [vmem:[%s3408_s19 + $0x38] sm:$0xf0]  ;;  %v2702_v11 = vld [vmem:[%s3408_s19 + $0xc0] sm:$0xf] }
 0x156   : > { %v1162_v32 = vpop.f32.mrf.mxu2  ;;  %v602_v21 = vpop.f32.mrf.mxu0 }
 0x157   : > { %v1806_v16 = vpop.f32.mrf.mxu3  ;;  %v1252_v13 = vadd.f32 %v3575_v41, %v1162_v32  ;;  %v1720_v36 = vpop.f32.mrf.mxu1  ;;  %v692_v39 = vadd.f32 %v3579_v45, %v602_v21  ;;  %v2926_v32 = vld [vmem:[%s3408_s19 + $0xc4] sm:$0xf0]  ;;  %v2451_v45 = vor.u32 %v2865_v8, %v2448_v19 }
 0x158   : > { %v3771_v12 = vadd.f32 %v1806_v16, %v1717_v18  ;;  %v2925_v16 = vld [vmem:[%s3408_s19 + $0xc4] sm:$0xf]  ;;  %v2703_v21 = vor.u32 %v2926_v32, %v2702_v11  ;;  %v2823_v11 = vld [vmem:[%s3408_s19 + $0x34] sm:$0xf]  ;;  %v2264_v32 = vld [vmem:[%s3408_s19 + $0x38] sm:$0xf0] }
 0x159   : > { %v3773_v4 = vadd.f32 %v1252_v13, %v689_v29  ;;  %2413 = vmatmul.msk.bf16.gmra.mxu0 %vm499_vm0, %v2251_v0  ;;  %v2259_v13 = vor.u32 %v2821_v9, %v2256_v58 }
 0x15a   : > { %1759 = vmatmul.bf16.gmra.mxu1 %v2695_v46 }
 0x15b   : > { %2605 = vmatmul.msk.bf16.gmra.mxu2 %vm499_vm0, %v2443_v25  ;;  %v2704_v25 = vld [vmem:[%s3408_s19 + $0xc8] sm:$0xf0] }
 0x15c   : > { %2805 = vmatmul.msk.bf16.gmra.mxu3 %vm499_vm0, %v2699_v54 }
 0x15e   : > { %v1165_v31 = vpop.f32.mrf.mxu2  ;;  %v604_v22 = vpop.f32.mrf.mxu0 }
 0x15f   : > { %v1809_v41 = vpop.f32.mrf.mxu3  ;;  %v1255_v18 = vadd.f32 %v3584_v49, %v1165_v31  ;;  %v1722_v42 = vpop.f32.mrf.mxu1  ;;  %v694_v49 = vadd.f32 %v3588_v51, %v604_v22 }
 0x160   : > { %v3780_v38 = vadd.f32 %v1809_v41, %v1720_v36 }
 0x161   : > { %v3782_v0 = vadd.f32 %v1255_v18, %v692_v39  ;;  %v2707_v39 = vor.u32 %v2925_v16, %v2704_v25  ;;  %v2867_v16 = vld [vmem:[%s3408_s19 + $0x44] sm:$0xf]  ;;  %v2456_v25 = vld [vmem:[%s3408_s19 + $0x48] sm:$0xf0] }
 0x166   : > { %v1167_v46 = vpop.f32.mrf.mxu2  ;;  %v607_v31 = vpop.f32.mrf.mxu0 }
 0x167   : > { %v1811_v29 = vpop.f32.mrf.mxu3  ;;  %v1257_v36 = vadd.f32 %v3600_v61, %v1167_v46  ;;  %v1725_v41 = vpop.f32.mrf.mxu1  ;;  %v697_v22 = vadd.f32 %v3604_v1, %v607_v31  ;;  %v2710_v46 = vld [vmem:[%s3408_s19 + $0xd0] sm:$0xf]  ;;  %v2459_v1 = vor.u32 %v2867_v16, %v2456_v25 }
 0x168   : > { %v3794_v54 = vadd.f32 %v1811_v29, %v1722_v42  ;;  %v2928_v29 = vld [vmem:[%s3408_s19 + $0xd4] sm:$0xf0] }
 0x169   : > { %v3796_v18 = vadd.f32 %v1257_v36, %v694_v49  ;;  %2414 = vmatmul.msk.bf16.gmra.mxu0 %vm499_vm0, %v2259_v13  ;;  %v2927_v13 = vld [vmem:[%s3408_s19 + $0xd4] sm:$0xf]  ;;  %v2267_v36 = vor.u32 %v2823_v11, %v2264_v32  ;;  %v2711_v31 = vor.u32 %v2928_v29, %v2710_v46  ;;  %v2825_v46 = vld [vmem:[%s3408_s19 + $0x44] sm:$0xf]  ;;  %v2272_v29 = vld [vmem:[%s3408_s19 + $0x48] sm:$0xf0] }
 0x16a   : > { %1764 = vmatmul.bf16.gmra.mxu1 %v2703_v21 }
 0x16b   : > { %2606 = vmatmul.msk.bf16.gmra.mxu2 %vm499_vm0, %v2451_v45  ;;  %v2712_v45 = vld [vmem:[%s3408_s19 + $0xd8] sm:$0xf0] }
 0x16c   : > { %2806 = vmatmul.msk.bf16.gmra.mxu3 %vm499_vm0, %v2707_v39 }
 0x16e   : > { %v1170_v51 = vpop.f32.mrf.mxu2  ;;  %v609_v58 = vpop.f32.mrf.mxu0 }
 0x16f   : > { %v1814_v61 = vpop.f32.mrf.mxu3  ;;  %v1260_v42 = vadd.f32 %v3609_v5, %v1170_v51  ;;  %v1727_v8 = vpop.f32.mrf.mxu1  ;;  %v699_v5 = vadd.f32 %v3613_v7, %v609_v58 }
 0x170   : > { %v3803_v9 = vadd.f32 %v1814_v61, %v1725_v41 }
 0x171   : > { %v3805_v19 = vadd.f32 %v1260_v42, %v697_v22  ;;  %v2715_v22 = vor.u32 %v2927_v13, %v2712_v45  ;;  %v2869_v13 = vld [vmem:[%s3408_s19 + $0x54] sm:$0xf]  ;;  %v2464_v45 = vld [vmem:[%s3408_s19 + $0x58] sm:$0xf0] }
 0x176   : > { %v1172_v21 = vpop.f32.mrf.mxu2  ;;  %v612_v51 = vpop.f32.mrf.mxu0 }
 0x177   : > { %v1816_v49 = vpop.f32.mrf.mxu3  ;;  %v1262_v41 = vadd.f32 %v3625_v20, %v1172_v21  ;;  %v1730_v61 = vpop.f32.mrf.mxu1  ;;  %v702_v58 = vadd.f32 %v3629_v27, %v612_v51  ;;  %v2718_v21 = vld [vmem:[%s3408_s19 + $0xe0] sm:$0xf]  ;;  %v2467_v27 = vor.u32 %v2869_v13, %v2464_v45 }
 0x178   : > { %v3817_v39 = vadd.f32 %v1816_v49, %v1727_v8  ;;  %v2930_v49 = vld [vmem:[%s3408_s19 + $0xe4] sm:$0xf0] }
 0x179   : > { %v3819_v42 = vadd.f32 %v1262_v41, %v699_v5  ;;  %2415 = vmatmul.msk.bf16.gmra.mxu0 %vm499_vm0, %v2267_v36  ;;  %v2929_v36 = vld [vmem:[%s3408_s19 + $0xe4] sm:$0xf]  ;;  %v2275_v41 = vor.u32 %v2825_v46, %v2272_v29  ;;  %v2719_v51 = vor.u32 %v2930_v49, %v2718_v21  ;;  %v2827_v21 = vld [vmem:[%s3408_s19 + $0x54] sm:$0xf]  ;;  %v2280_v49 = vld [vmem:[%s3408_s19 + $0x58] sm:$0xf0] }
 0x17a   : > { %1769 = vmatmul.bf16.gmra.mxu1 %v2711_v31 }
 0x17b   : > { %2607 = vmatmul.msk.bf16.gmra.mxu2 %vm499_vm0, %v2459_v1  ;;  %v2720_v1 = vld [vmem:[%s3408_s19 + $0xe8] sm:$0xf0] }
 0x17c   : > { %2807 = vmatmul.msk.bf16.gmra.mxu3 %vm499_vm0, %v2715_v22 }
 0x17e   : > { %v1175_v7 = vpop.f32.mrf.mxu2  ;;  %v614_v32 = vpop.f32.mrf.mxu0 }
 0x17f   : > { %v1819_v20 = vpop.f32.mrf.mxu3  ;;  %v1265_v8 = vadd.f32 %v3634_v35, %v1175_v7  ;;  %v1732_v16 = vpop.f32.mrf.mxu1  ;;  %v704_v35 = vadd.f32 %v3638_v37, %v614_v32 }
 0x180   : > { %v3826_v11 = vadd.f32 %v1819_v20, %v1730_v61 }
 0x181   : > { %v3828_v25 = vadd.f32 %v1265_v8, %v702_v58  ;;  %v2723_v58 = vor.u32 %v2929_v36, %v2720_v1  ;;  %v2871_v36 = vld [vmem:[%s3408_s19 + $0x64] sm:$0xf]  ;;  %v2472_v1 = vld [vmem:[%s3408_s19 + $0x68] sm:$0xf0] }
 0x186   : > { %v1177_v31 = vpop.f32.mrf.mxu2  ;;  %v617_v7 = vpop.f32.mrf.mxu0 }
 0x187   : > { %v1821_v5 = vpop.f32.mrf.mxu3  ;;  %v1267_v61 = vadd.f32 %v3650_v55, %v1177_v31  ;;  %v1735_v20 = vpop.f32.mrf.mxu1  ;;  %v707_v32 = vadd.f32 %v3654_v59, %v617_v7  ;;  %v2726_v31 = vld [vmem:[%s3408_s19 + $0xf0] sm:$0xf]  ;;  %v2475_v59 = vor.u32 %v2871_v36, %v2472_v1 }
 0x188   : > { %v3840_v22 = vadd.f32 %v1821_v5, %v1732_v16  ;;  %v2932_v5 = vld [vmem:[%s3408_s19 + $0xf4] sm:$0xf0] }
 0x189   : > { %v3842_v8 = vadd.f32 %v1267_v61, %v704_v35  ;;  %2416 = vmatmul.msk.bf16.gmra.mxu0 %vm499_vm0, %v2275_v41  ;;  %v2931_v41 = vld [vmem:[%s3408_s19 + $0xf4] sm:$0xf]  ;;  %v2283_v61 = vor.u32 %v2827_v21, %v2280_v49  ;;  %v2727_v7 = vor.u32 %v2932_v5, %v2726_v31  ;;  %v2829_v31 = vld [vmem:[%s3408_s19 + $0x64] sm:$0xf]  ;;  %v2288_v5 = vld [vmem:[%s3408_s19 + $0x68] sm:$0xf0] }
 0x18a   : > { %1774 = vmatmul.bf16.gmra.mxu1 %v2719_v51 }
 0x18b   : > { %2608 = vmatmul.msk.bf16.gmra.mxu2 %vm499_vm0, %v2467_v27  ;;  %v2728_v27 = vld [vmem:[%s3408_s19 + $0xf8] sm:$0xf0] }
 0x18c   : > { %2808 = vmatmul.msk.bf16.gmra.mxu3 %vm499_vm0, %v2723_v58 }
 0x18e   : > { %v1180_v37 = vpop.f32.mrf.mxu2  ;;  %v619_v29 = vpop.f32.mrf.mxu0 }
 0x18f   : > { %v1824_v55 = vpop.f32.mrf.mxu3  ;;  %v1270_v16 = vadd.f32 %v3659_v3, %v1180_v37  ;;  %v1737_v13 = vpop.f32.mrf.mxu1  ;;  %v709_v3 = vadd.f32 %v3663_v10, %v619_v29 }
 0x190   : > { %v3849_v46 = vadd.f32 %v1824_v55, %v1735_v20 }
 0x191   : > { %v3851_v45 = vadd.f32 %v1270_v16, %v707_v32  ;;  %v2731_v32 = vor.u32 %v2931_v41, %v2728_v27  ;;  %v2873_v41 = vld [vmem:[%s3408_s19 + $0x74] sm:$0xf]  ;;  %v2480_v27 = vld [vmem:[%s3408_s19 + $0x78] sm:$0xf0] }
 0x196   : > { %v1182_v51 = vpop.f32.mrf.mxu2  ;;  %v622_v37 = vpop.f32.mrf.mxu0 }
 0x197   : > { %v1826_v35 = vpop.f32.mrf.mxu3  ;;  %v1272_v20 = vadd.f32 %v3675_v33, %v1182_v51  ;;  %v1740_v55 = vpop.f32.mrf.mxu1  ;;  %v712_v29 = vadd.f32 %v3679_v43, %v622_v37  ;;  %v2734_v51 = vld [vmem:[%s3408_s19 + $0x100] sm:$0xf]  ;;  %v2483_v43 = vor.u32 %v2873_v41, %v2480_v27 }
 0x198   : > { %v3863_v58 = vadd.f32 %v1826_v35, %v1737_v13  ;;  %v2934_v35 = vld [vmem:[%s3408_s19 + $0x104] sm:$0xf0] }
 0x199   : > { %v3865_v16 = vadd.f32 %v1272_v20, %v709_v3  ;;  %2417 = vmatmul.msk.bf16.gmra.mxu0 %vm499_vm0, %v2283_v61  ;;  %v2933_v61 = vld [vmem:[%s3408_s19 + $0x104] sm:$0xf]  ;;  %v2291_v20 = vor.u32 %v2829_v31, %v2288_v5  ;;  %v2735_v37 = vor.u32 %v2934_v35, %v2734_v51  ;;  %v2742_v51 = vld [vmem:[%s3408_s19 + $0x110] sm:$0xf]  ;;  %v2936_v35 = vld [vmem:[%s3408_s19 + $0x114] sm:$0xf0] }
 0x19a   : > { %1779 = vmatmul.bf16.gmra.mxu1 %v2727_v7 }
 0x19b   : > { %2609 = vmatmul.msk.bf16.gmra.mxu2 %vm499_vm0, %v2475_v59  ;;  %v2736_v59 = vld [vmem:[%s3408_s19 + $0x108] sm:$0xf0] }
 0x19c   : > { %2809 = vmatmul.msk.bf16.gmra.mxu3 %vm499_vm0, %v2731_v32 }
 0x19e   : > { %v1185_v10 = vpop.f32.mrf.mxu2  ;;  %v624_v49 = vpop.f32.mrf.mxu0 }
 0x19f   : > { %v1829_v33 = vpop.f32.mrf.mxu3  ;;  %v1275_v13 = vadd.f32 %v3684_v53, %v1185_v10  ;;  %v1742_v36 = vpop.f32.mrf.mxu1  ;;  %v714_v53 = vadd.f32 %v3688_v57, %v624_v49 }
 0x1a0   : > { %v3872_v21 = vadd.f32 %v1829_v33, %v1740_v55 }
 0x1a1   : > { %v3874_v1 = vadd.f32 %v1275_v13, %v712_v29  ;;  %v2739_v29 = vor.u32 %v2933_v61, %v2736_v59  ;;  %v2935_v61 = vld [vmem:[%s3408_s19 + $0x114] sm:$0xf]  ;;  %v2744_v59 = vld [vmem:[%s3408_s19 + $0x118] sm:$0xf0] }
 0x1a6   : > { %v1187_v7 = vpop.f32.mrf.mxu2  ;;  %v627_v10 = vpop.f32.mrf.mxu0 }
 0x1a7   : > { %v1831_v3 = vpop.f32.mrf.mxu3  ;;  %v1277_v55 = vadd.f32 %v3700_v23, %v1187_v7  ;;  %v1745_v33 = vpop.f32.mrf.mxu1  ;;  %v717_v49 = vadd.f32 %v3704_v47, %v627_v10 }
 0x1a8   : > { %v3886_v32 = vadd.f32 %v1831_v3, %v1742_v36 }
 0x1a9   : > { %v3888_v13 = vadd.f32 %v1277_v55, %v714_v53  ;;  %2418 = vmatmul.msk.bf16.gmra.mxu0 %vm499_vm0, %v2291_v20  ;;  %v2743_v20 = vor.u32 %v2936_v35, %v2742_v51  ;;  %v2747_v55 = vor.u32 %v2935_v61, %v2744_v59 }
 0x1aa   : > { %1784 = vmatmul.bf16.gmra.mxu1 %v2735_v37 }
 0x1ab   : > { %2610 = vmatmul.msk.bf16.gmra.mxu2 %vm499_vm0, %v2483_v43 }
 0x1ac   : > { %2810 = vmatmul.msk.bf16.gmra.mxu3 %vm499_vm0, %v2739_v29 }
 0x1ae   : > { %v1190_v57 = vpop.f32.mrf.mxu2  ;;  %v629_v5 = vpop.f32.mrf.mxu0 }
 0x1af   : > { %v1834_v23 = vpop.f32.mrf.mxu3  ;;  %v1280_v36 = vadd.f32 %v3709_v62, %v1190_v57  ;;  %v1747_v41 = vpop.f32.mrf.mxu1  ;;  %v719_v43 = vadd.f32 %v3713_v14, %v629_v5 }
 0x1b0   : > { %v3895_v31 = vadd.f32 %v1834_v23, %v1745_v33 }
 0x1b1   : > { %v3897_v27 = vadd.f32 %v1280_v36, %v717_v49 }
 0x1b6   : > { %v1192_v7 = vpop.f32.mrf.mxu2  ;;  %v632_v62 = vpop.f32.mrf.mxu0 }
 0x1b7   : > { %v1836_v3 = vpop.f32.mrf.mxu3  ;;  %v1282_v37 = vadd.f32 %v3725_v56, %v1192_v7  ;;  %v1750_v53 = vpop.f32.mrf.mxu1  ;;  %v722_v57 = vadd.f32 %v3727_v63, %v632_v62 }
 0x1b8   : > { %v3905_v47 = vadd.f32 %v1836_v3, %v1747_v41  ;;  %v3918_v41 = vld [vmem:[%s4075_s2] ss:$0 sm:$0xff] }
 0x1b9   : > { %v3907_v10 = vadd.f32 %v1282_v37, %v719_v43 }
 0x1ba   : > { %1789 = vmatmul.bf16.gmra.mxu1 %v2743_v20 }
 0x1bc   : > { %2811 = vmatmul.msk.bf16.gmra.mxu3 %vm499_vm0, %v2747_v55 }
 0x1be   : > { %v1195_v33 = vpop.f32.mrf.mxu2  ;;  %v634_v49 = vpop.f32.mrf.mxu0 }
 0x1bf   : > { %v1839_v29 = vpop.f32.mrf.mxu3  ;;  %v1285_v23 = vadd.f32 %v3730_v15, %v1195_v33  ;;  %v1752_v14 = vpop.f32.mrf.mxu1  ;;  %v724_v61 = vadd.f32 %v3734_v52, %v634_v49 }
 0x1c0   : > { %v1840_v36 = vadd.f32 %v1839_v29, %v1750_v53 }
 0x1c1   : > { %v3912_v56 = vadd.f32 %v1285_v23, %v722_v57 }
 0x1c2   : > { %v1898_v5 = vadd.f32 %v1840_v36, %v3736_v17 }
 0x1c4   : > { %v1998_v3 = vadd.f32 %v3918_v41, %v1898_v5 }
 0x1c6   : > { %v1197_v51 = vpop.f32.mrf.mxu2  ;;  %v646_v59 = vpop.f32.mrf.mxu0  ;;  %v2030_v37 = vmax.f32 %v1998_v3, 0.0 }
 0x1c7   : > { %v1841_v35 = vpop.f32.mrf.mxu3  ;;  %v1287_v63 = vadd.f32 %v3746_v26, %v1197_v51  ;;  %v1755_v7 = vpop.f32.mrf.mxu1  ;;  %v647_v57 = vadd.f32 %v646_v59, %v3552_v24 }
 0x1c8   : > { %v1842_v15 = vadd.f32 %v1841_v35, %v1752_v14 }
 0x1c9   : > { %v3923_v20 = vadd.f32 %v1287_v63, %v724_v61 }
 0x1ca   : > { %v1899_v17 = vadd.f32 %v1842_v15, %v3750_v6 }
 0x1cc   : > { %v1999_v43 = vadd.f32 %v3918_v41, %v1899_v17 }
 0x1ce   : > { %v2031_v62 = vmax.f32 %v1999_v43, 0.0  ;;  %v1209_v53 = vpop.f32.mrf.mxu2  ;;  %v648_v26 = vpop.f32.mrf.mxu0 }
 0x1cf   : > { %v1844_v55 = vpop.f32.mrf.mxu3  ;;  %v1210_v52 = vadd.f32 %v1209_v53, %v3557_v28  ;;  %v1757_v29 = vpop.f32.mrf.mxu1  ;;  %v649_v51 = vadd.f32 %v648_v26, %v3561_v30 }
 0x1d0   : > { %v2988_v33 = vpack.c.bf16 %v2031_v62, %v2030_v37  ;;  %v1845_v23 = vadd.f32 %v1844_v55, %v1755_v7 }
 0x1d1   : > { %v1289_v6 = vadd.f32 %v1210_v52, %v647_v57 }
 0x1d2   : > { %3036 = vst [vmem:[%s3929_s9 + $0x38] sm:$0xff] %v2988_v33   ;;  %v1900_v49 = vadd.f32 %v1845_v23, %v3759_v34 }
 0x1d3   : > { %v1884_v5 = vadd.f32 %v3757_v2, %v1289_v6 }
 0x1d4   : > { %v2000_v15 = vadd.f32 %v3918_v41, %v1900_v49 }
 0x1d5   : > { %v1984_v59 = vadd.f32 %v3918_v41, %v1884_v5 }
 0x1d6   : > { %v1211_v14 = vpop.f32.mrf.mxu2  ;;  %v651_v61 = vpop.f32.mrf.mxu0  ;;  %v2032_v2 = vmax.f32 %v2000_v15, 0.0 }
 0x1d7   : > { %v1846_v36 = vpop.f32.mrf.mxu3  ;;  %v1212_v28 = vadd.f32 %v1211_v14, %v3573_v40  ;;  %v1760_v63 = vpop.f32.mrf.mxu1  ;;  %v2016_v37 = vmax.f32 %v1984_v59, 0.0 }
 0x1d8   : > { %v1847_v35 = vadd.f32 %v1846_v36, %v1757_v29 }
 0x1d9   : > { %v1290_v3 = vadd.f32 %v1212_v28, %v649_v51 }
 0x1da   : > { %v1901_v24 = vadd.f32 %v1847_v35, %v3773_v4 }
 0x1db   : > { %v1885_v34 = vadd.f32 %v3771_v12, %v1290_v3  ;;  %v652_v12 = vadd.f32 %v651_v61, %v3577_v44 }
 0x1dc   : > { %v2001_v7 = vadd.f32 %v3918_v41, %v1901_v24 }
 0x1dd   : > { %v1985_v30 = vadd.f32 %v3918_v41, %v1885_v34 }
 0x1de   : > { %v2033_v40 = vmax.f32 %v2001_v7, 0.0  ;;  %v1214_v17 = vpop.f32.mrf.mxu2  ;;  %v653_v4 = vpop.f32.mrf.mxu0  ;;  %v4103_v7 = vld [vmem:[#allocation13_spill] sm:$0xff] }
 0x1df   : > { %v1849_v43 = vpop.f32.mrf.mxu3  ;;  %v2017_v62 = vmax.f32 %v1985_v30, 0.0  ;;  %v1215_v55 = vadd.f32 %v1214_v17, %v3582_v48  ;;  %v1762_v33 = vpop.f32.mrf.mxu1  ;;  %v654_v14 = vadd.f32 %v653_v4, %v3586_v50  ;;  %v4104_v17 = vld [vmem:[#allocation12_spill] sm:$0xff] }
 0x1e0   : > { %v2993_v53 = vpack.c.bf16 %v2033_v40, %v2032_v2  ;;  %v1850_v26 = vadd.f32 %v1849_v43, %v1760_v63 }
 0x1e1   : > { %v2953_v52 = vpack.c.bf16 %v2017_v62, %v2016_v37  ;;  %v1291_v29 = vadd.f32 %v1215_v55, %v652_v12  ;;  %v4106_v12 = vld [vmem:[#allocation15_spill] sm:$0xff] }
 0x1e2   : > { %3037 = vst [vmem:[%s3929_s9 + $0x40] sm:$0xff] %v2993_v53   ;;  %v1902_v57 = vadd.f32 %v1850_v26, %v3782_v0 }
 0x1e3   : > { %2954 = vst [vmem:[%s3929_s9] sm:$0xff] %v2953_v52   ;;  %v1886_v49 = vadd.f32 %v3780_v38, %v1291_v29 }
 0x1e4   : > { %v2002_v28 = vadd.f32 %v3918_v41, %v1902_v57 }
 0x1e5   : > { %v1986_v61 = vadd.f32 %v3918_v41, %v1886_v49 }
 0x1e6   : > { %v1216_v23 = vpop.f32.mrf.mxu2  ;;  %v656_v5 = vpop.f32.mrf.mxu0  ;;  %v2034_v38 = vmax.f32 %v2002_v28, 0.0 }
 0x1e7   : > { %v1851_v6 = vpop.f32.mrf.mxu3  ;;  %v1217_v36 = vadd.f32 %v1216_v23, %v3598_v60  ;;  %v1765_v51 = vpop.f32.mrf.mxu1  ;;  %v2018_v24 = vmax.f32 %v1986_v61, 0.0 }
 0x1e8   : > { %v1852_v48 = vadd.f32 %v1851_v6, %v1762_v33  ;;  %v4105_v33 = vld [vmem:[#allocation14_spill] sm:$0xff] }
 0x1e9   : > { %v1292_v35 = vadd.f32 %v1217_v36, %v654_v14 }
 0x1ea   : > { %v1903_v44 = vadd.f32 %v1852_v48, %v3796_v18 }
 0x1eb   : > { %v1887_v0 = vadd.f32 %v3794_v54, %v1292_v35  ;;  %v657_v54 = vadd.f32 %v656_v5, %v4104_v17 }
 0x1ec   : > { %v2003_v63 = vadd.f32 %v3918_v41, %v1903_v44 }
 0x1ed   : > { %v1987_v50 = vadd.f32 %v3918_v41, %v1887_v0 }
 0x1ee   : > { %v2035_v60 = vmax.f32 %v2003_v63, 0.0  ;;  %v1219_v15 = vpop.f32.mrf.mxu2  ;;  %v658_v18 = vpop.f32.mrf.mxu0  ;;  %v4107_v63 = vld [vmem:[#allocation17_spill] sm:$0xff] }
 0x1ef   : > { %v1854_v3 = vpop.f32.mrf.mxu3  ;;  %v2019_v59 = vmax.f32 %v1987_v50, 0.0  ;;  %v1220_v2 = vadd.f32 %v1219_v15, %v4103_v7  ;;  %v1767_v30 = vpop.f32.mrf.mxu1  ;;  %v659_v52 = vadd.f32 %v658_v18, %v4105_v33  ;;  %v4108_v15 = vld [vmem:[#allocation16_spill] sm:$0xff]  ;;  %v4109_v18 = vld [vmem:[#allocation18_spill] sm:$0xff] }
 0x1f0   : > { %v2998_v34 = vpack.c.bf16 %v2035_v60, %v2034_v38  ;;  %v1855_v43 = vadd.f32 %v1854_v3, %v1765_v51 }
 0x1f1   : > { %v2958_v40 = vpack.c.bf16 %v2019_v59, %v2018_v24  ;;  %v1293_v37 = vadd.f32 %v1220_v2, %v657_v54 }
 0x1f2   : > { %3038 = vst [vmem:[%s3929_s9 + $0x48] sm:$0xff] %v2998_v34   ;;  %v1904_v62 = vadd.f32 %v1855_v43, %v3805_v19 }
 0x1f3   : > { %3030 = vst [vmem:[%s3929_s9 + $0x8] sm:$0xff] %v2958_v40   ;;  %v1888_v4 = vadd.f32 %v3803_v9, %v1293_v37  ;;  %v4110_v40 = vld [vmem:[#allocation19_spill] sm:$0xff] }
 0x1f4   : > { %v2004_v6 = vadd.f32 %v3918_v41, %v1904_v62 }
 0x1f5   : > { %v1988_v36 = vadd.f32 %v3918_v41, %v1888_v4 }
 0x1f6   : > { %v1221_v53 = vpop.f32.mrf.mxu2  ;;  %v661_v57 = vpop.f32.mrf.mxu0  ;;  %v2036_v9 = vmax.f32 %v2004_v6, 0.0 }
 0x1f7   : > { %v1856_v55 = vpop.f32.mrf.mxu3  ;;  %v1222_v26 = vadd.f32 %v1221_v53, %v4106_v12  ;;  %v1770_v23 = vpop.f32.mrf.mxu1  ;;  %v2020_v44 = vmax.f32 %v1988_v36, 0.0 }
 0x1f8   : > { %v1857_v29 = vadd.f32 %v1856_v55, %v1767_v30 }
 0x1f9   : > { %v1294_v49 = vadd.f32 %v1222_v26, %v659_v52 }
 0x1fa   : > { %v1905_v14 = vadd.f32 %v1857_v29, %v3819_v42 }
 0x1fb   : > { %v1889_v19 = vadd.f32 %v3817_v39, %v1294_v49  ;;  %v662_v39 = vadd.f32 %v661_v57, %v4108_v15  ;;  %v4111_v49 = vld [vmem:[#allocation21_spill] sm:$0xff] }
 0x1fc   : > { %v2005_v48 = vadd.f32 %v3918_v41, %v1905_v14 }
 0x1fd   : > { %v1989_v5 = vadd.f32 %v3918_v41, %v1889_v19 }
 0x1fe   : > { %v2037_v51 = vmax.f32 %v2005_v48, 0.0  ;;  %v1224_v28 = vpop.f32.mrf.mxu2  ;;  %v663_v42 = vpop.f32.mrf.mxu0  ;;  %v4112_v48 = vld [vmem:[#allocation20_spill] sm:$0xff] }
 0x1ff   : > { %v1859_v35 = vpop.f32.mrf.mxu3  ;;  %v2021_v61 = vmax.f32 %v1989_v5, 0.0  ;;  %v1225_v38 = vadd.f32 %v1224_v28, %v4107_v63  ;;  %v1772_v50 = vpop.f32.mrf.mxu1  ;;  %v664_v30 = vadd.f32 %v663_v42, %v4109_v18  ;;  %v4114_v63 = vld [vmem:[#allocation23_spill] sm:$0xff] }
 0x200   : > { %v3003_v0 = vpack.c.bf16 %v2037_v51, %v2036_v9  ;;  %v1860_v3 = vadd.f32 %v1859_v35, %v1770_v23 }
 0x201   : > { %v2963_v60 = vpack.c.bf16 %v2021_v61, %v2020_v44  ;;  %v1295_v24 = vadd.f32 %v1225_v38, %v662_v39  ;;  %v4113_v61 = vld [vmem:[#allocation22_spill] sm:$0xff] }
 0x202   : > { %3039 = vst [vmem:[%s3929_s9 + $0x50] sm:$0xff] %v3003_v0   ;;  %v1906_v59 = vadd.f32 %v1860_v3, %v3828_v25 }
 0x203   : > { %3031 = vst [vmem:[%s3929_s9 + $0x10] sm:$0xff] %v2963_v60   ;;  %v1890_v2 = vadd.f32 %v3826_v11, %v1295_v24 }
 0x204   : > { %v2006_v62 = vadd.f32 %v3918_v41, %v1906_v59 }
 0x205   : > { %v1990_v4 = vadd.f32 %v3918_v41, %v1890_v2 }
 0x206   : > { %v1226_v34 = vpop.f32.mrf.mxu2  ;;  %v666_v43 = vpop.f32.mrf.mxu0  ;;  %v2038_v11 = vmax.f32 %v2006_v62, 0.0 }
 0x207   : > { %v1861_v7 = vpop.f32.mrf.mxu3  ;;  %v1227_v17 = vadd.f32 %v1226_v34, %v4110_v40  ;;  %v1775_v37 = vpop.f32.mrf.mxu1  ;;  %v2022_v57 = vmax.f32 %v1990_v4, 0.0 }
 0x208   : > { %v1862_v54 = vadd.f32 %v1861_v7, %v1772_v50 }
 0x209   : > { %v1296_v53 = vadd.f32 %v1227_v17, %v664_v30 }
 0x20a   : > { %v1907_v55 = vadd.f32 %v1862_v54, %v3842_v8  ;;  %v4115_v54 = vld [vmem:[#allocation25_spill] sm:$0xff] }
 0x20b   : > { %v1891_v25 = vadd.f32 %v3840_v22, %v1296_v53  ;;  %v667_v22 = vadd.f32 %v666_v43, %v4112_v48  ;;  %v4116_v53 = vld [vmem:[#allocation24_spill] sm:$0xff] }
 0x20c   : > { %v2007_v33 = vadd.f32 %v3918_v41, %v1907_v55 }
 0x20d   : > { %v1991_v52 = vadd.f32 %v3918_v41, %v1891_v25 }
 0x20e   : > { %v2039_v12 = vmax.f32 %v2007_v33, 0.0  ;;  %v1229_v26 = vpop.f32.mrf.mxu2  ;;  %v668_v8 = vpop.f32.mrf.mxu0 }
 0x20f   : > { %v1864_v29 = vpop.f32.mrf.mxu3  ;;  %v2023_v23 = vmax.f32 %v1991_v52, 0.0  ;;  %v1230_v14 = vadd.f32 %v1229_v26, %v4111_v49  ;;  %v1777_v36 = vpop.f32.mrf.mxu1  ;;  %v669_v0 = vadd.f32 %v668_v8, %v4113_v61  ;;  %v4119_v61 = vld [vmem:[#allocation29_spill] sm:$0xff] }
 0x210   : > { %v3008_v6 = vpack.c.bf16 %v2039_v12, %v2038_v11  ;;  %v1865_v9 = vadd.f32 %v1864_v29, %v1775_v37  ;;  %v4117_v12 = vld [vmem:[#allocation26_spill] sm:$0xff]  ;;  %v4118_v29 = vld [vmem:[#allocation27_spill] sm:$0xff] }
 0x211   : > { %v2968_v19 = vpack.c.bf16 %v2023_v23, %v2022_v57  ;;  %v1297_v5 = vadd.f32 %v1230_v14, %v667_v22 }
 0x212   : > { %3040 = vst [vmem:[%s3929_s9 + $0x58] sm:$0xff] %v3008_v6   ;;  %v1908_v51 = vadd.f32 %v1865_v9, %v3851_v45 }
 0x213   : > { %3032 = vst [vmem:[%s3929_s9 + $0x18] sm:$0xff] %v2968_v19   ;;  %v1892_v44 = vadd.f32 %v3849_v46, %v1297_v5 }
 0x214   : > { %v2008_v15 = vadd.f32 %v3918_v41, %v1908_v51 }
 0x215   : > { %v1992_v24 = vadd.f32 %v3918_v41, %v1892_v44 }
 0x216   : > { %v1231_v28 = vpop.f32.mrf.mxu2  ;;  %v671_v50 = vpop.f32.mrf.mxu0  ;;  %v2040_v46 = vmax.f32 %v2008_v15, 0.0 }
 0x217   : > { %v1866_v35 = vpop.f32.mrf.mxu3  ;;  %v1232_v38 = vadd.f32 %v1231_v28, %v4114_v63  ;;  %v1780_v60 = vpop.f32.mrf.mxu1  ;;  %v2024_v30 = vmax.f32 %v1992_v24, 0.0  ;;  %v4120_v63 = vld [vmem:[#allocation28_spill] sm:$0xff] }
 0x218   : > { %v1867_v42 = vadd.f32 %v1866_v35, %v1777_v36 }
 0x219   : > { %v1298_v39 = vadd.f32 %v1232_v38, %v669_v0 }
 0x21a   : > { %v1909_v3 = vadd.f32 %v1867_v42, %v3865_v16 }
 0x21b   : > { %v1893_v45 = vadd.f32 %v3863_v58, %v1298_v39  ;;  %v672_v58 = vadd.f32 %v671_v50, %v4116_v53 }
 0x21c   : > { %v2009_v59 = vadd.f32 %v3918_v41, %v1909_v3 }
 0x21d   : > { %v1993_v34 = vadd.f32 %v3918_v41, %v1893_v45  ;;  %v4121_v45 = vld [vmem:[#allocation30_spill] sm:$0xff] }
 0x21e   : > { %v2041_v7 = vmax.f32 %v2009_v59, 0.0  ;;  %v1234_v2 = vpop.f32.mrf.mxu2  ;;  %v673_v37 = vpop.f32.mrf.mxu0 }
 0x21f   : > { %v1869_v18 = vpop.f32.mrf.mxu3  ;;  %v2025_v40 = vmax.f32 %v1993_v34, 0.0  ;;  %v1235_v43 = vadd.f32 %v1234_v2, %v4115_v54  ;;  %v1782_v16 = vpop.f32.mrf.mxu1  ;;  %v674_v26 = vadd.f32 %v673_v37, %v4117_v12 }
 0x220   : > { %v3013_v17 = vpack.c.bf16 %v2041_v7, %v2040_v46  ;;  %v1870_v55 = vadd.f32 %v1869_v18, %v1780_v60  ;;  %v4122_v46 = vld [vmem:[#allocation31_spill] sm:$0xff] }
 0x221   : > { %v2973_v62 = vpack.c.bf16 %v2025_v40, %v2024_v30  ;;  %v1299_v4 = vadd.f32 %v1235_v43, %v672_v58 }
 0x222   : > { %3041 = vst [vmem:[%s3929_s9 + $0x60] sm:$0xff] %v3013_v17   ;;  %v1910_v25 = vadd.f32 %v1870_v55, %v3874_v1 }
 0x223   : > { %3033 = vst [vmem:[%s3929_s9 + $0x20] sm:$0xff] %v2973_v62   ;;  %v1894_v52 = vadd.f32 %v3872_v21, %v1299_v4 }
 0x224   : > { %v2010_v49 = vadd.f32 %v3918_v41, %v1910_v25 }
 0x225   : > { %v1994_v19 = vadd.f32 %v3918_v41, %v1894_v52 }
 0x226   : > { %v1236_v33 = vpop.f32.mrf.mxu2  ;;  %v676_v36 = vpop.f32.mrf.mxu0  ;;  %v2042_v48 = vmax.f32 %v2010_v49, 0.0 }
 0x227   : > { %v1871_v11 = vpop.f32.mrf.mxu3  ;;  %v1237_v57 = vadd.f32 %v1236_v33, %v4118_v29  ;;  %v1785_v6 = vpop.f32.mrf.mxu1  ;;  %v2026_v28 = vmax.f32 %v1994_v19, 0.0  ;;  %v677_v38 = vadd.f32 %v676_v36, %v4120_v63 }
 0x228   : > { %v1872_v23 = vadd.f32 %v1871_v11, %v1782_v16 }
 0x229   : > { %v1300_v14 = vadd.f32 %v1237_v57, %v674_v26 }
 0x22a   : > { %v1911_v8 = vadd.f32 %v1872_v23, %v3888_v13 }
 0x22b   : > { %v1895_v1 = vadd.f32 %v3886_v32, %v1300_v14 }
 0x22c   : > { %v2011_v21 = vadd.f32 %v3918_v41, %v1911_v8 }
 0x22d   : > { %v1995_v22 = vadd.f32 %v3918_v41, %v1895_v1 }
 0x22e   : > { %v2043_v9 = vmax.f32 %v2011_v21, 0.0  ;;  %v1239_v5 = vpop.f32.mrf.mxu2  ;;  %v678_v60 = vpop.f32.mrf.mxu0 }
 0x22f   : > { %v1874_v51 = vpop.f32.mrf.mxu3  ;;  %v2027_v35 = vmax.f32 %v1995_v22, 0.0  ;;  %v1240_v0 = vadd.f32 %v1239_v5, %v4119_v61  ;;  %v1787_v32 = vpop.f32.mrf.mxu1  ;;  %v679_v59 = vadd.f32 %v678_v60, %v4121_v45 }
 0x230   : > { %v3018_v44 = vpack.c.bf16 %v2043_v9, %v2042_v48  ;;  %v1875_v42 = vadd.f32 %v1874_v51, %v1785_v6 }
 0x231   : > { %v2978_v13 = vpack.c.bf16 %v2027_v35, %v2026_v28  ;;  %v1301_v50 = vadd.f32 %v1240_v0, %v677_v38 }
 0x232   : > { %3042 = vst [vmem:[%s3929_s9 + $0x68] sm:$0xff] %v3018_v44   ;;  %v1912_v15 = vadd.f32 %v1875_v42, %v3897_v27 }
 0x233   : > { %3034 = vst [vmem:[%s3929_s9 + $0x28] sm:$0xff] %v2978_v13   ;;  %v1896_v24 = vadd.f32 %v3895_v31, %v1301_v50 }
 0x234   : > { %v2012_v2 = vadd.f32 %v3918_v41, %v1912_v15 }
 0x235   : > { %v1996_v40 = vadd.f32 %v3918_v41, %v1896_v24 }
 0x236   : > { %v1241_v39 = vpop.f32.mrf.mxu2  ;;  %v2044_v54 = vmax.f32 %v2012_v2, 0.0 }
 0x237   : > { %v1876_v3 = vpop.f32.mrf.mxu3  ;;  %v1242_v34 = vadd.f32 %v1241_v39, %v4122_v46  ;;  %v1790_v31 = vpop.f32.mrf.mxu1  ;;  %v2028_v62 = vmax.f32 %v1996_v40, 0.0 }
 0x238   : > { %v1877_v7 = vadd.f32 %v1876_v3, %v1787_v32 }
 0x239   : > { %v1302_v18 = vadd.f32 %v1242_v34, %v679_v59 }
 0x23a   : > { %v1913_v30 = vadd.f32 %v1877_v7, %v3907_v10 }
 0x23b   : > { %v1897_v27 = vadd.f32 %v3905_v47, %v1302_v18 }
 0x23c   : > { %v2013_v17 = vadd.f32 %v3918_v41, %v1913_v30 }
 0x23d   : > { %v1997_v43 = vadd.f32 %v3918_v41, %v1897_v27 }
 0x23e   : > { %v2045_v16 = vmax.f32 %v2013_v17, 0.0 }
 0x23f   : > { %v1879_v37 = vpop.f32.mrf.mxu3  ;;  %v2029_v53 = vmax.f32 %v1997_v43, 0.0  ;;  %v1792_v47 = vpop.f32.mrf.mxu1 }
 0x240   : > { %v3023_v58 = vpack.c.bf16 %v2045_v16, %v2044_v54  ;;  %v1880_v10 = vadd.f32 %v1879_v37, %v1790_v31 }
 0x241   : > { %v2983_v55 = vpack.c.bf16 %v2029_v53, %v2028_v62 }
 0x242   : > { %3043 = vst [vmem:[%s3929_s9 + $0x70] sm:$0xff] %v3023_v58   ;;  %v1914_v4 = vadd.f32 %v1880_v10, %v3912_v56 }
 0x243   : > { %3035 = vst [vmem:[%s3929_s9 + $0x30] sm:$0xff] %v2983_v55  }
 0x244   : > { %v2014_v11 = vadd.f32 %v3918_v41, %v1914_v4 }
 0x246   : > { %v2046_v56 = vmax.f32 %v2014_v11, 0.0 }
 0x247   : > { %v1881_v25 = vpop.f32.mrf.mxu3 }
 0x248   : > { %v1882_v33 = vadd.f32 %v1881_v25, %v1792_v47 }
 0x24a   : > { %v1915_v52 = vadd.f32 %v1882_v33, %v3923_v20 }
 0x24c   : > { %v2015_v12 = vadd.f32 %v3918_v41, %v1915_v52 }
 0x24e   : > { %v2047_v26 = vmax.f32 %v2015_v12, 0.0 }
 0x250   : > { %v3028_v29 = vpack.c.bf16 %v2047_v26, %v2046_v56 }
 0x252   : > { %3044 = vst [vmem:[%s3929_s9 + $0x78] sm:$0xff] %v3028_v29  }
 0x253   : > { %3223 = shalt.err (!%p3220_p0)
}
 0x254   : > { %s3289_s6 = smov 64   ;;  %s3290_s22 = smov 4  }
 0x255   : > { %3062 = dma.vmem_to_hbm [thread:$0]  (%p3386_p5), %s2128_s28, 2048, %s2130_s21, %s2113_s15, %s3289_s6, %s3289_s6, %s3290_s22  }
 0x256 PF: > { %s2144_s27 = sand.u32 1, %s3262_s12   ;;  %p3073_p3 = pnand %p2231_p11, %p3360_p6 }
 0x257   : > { %s2145_s9 = scalar_lea.sflag [#allocation5], %s2144_s27 }
 0x258   : > { %p3074_p7 = pneg %p3073_p3 }
 0x25a   : > { %3257 = dma.done.wait (%p3074_p7), %s2145_s9, 2048  }
 0x25b   : > { %3259 = vsyncadd (%p3074_p7), %s2145_s9, 4294965248  ;;  %s20_s17 = sadd.s32 1, %s3282_s17   ;;  %s4123_s12 = smov %s3266_s13 }
 0x25c   : > { %p17_p9 = scmp.ge.s32.totalorder %s20_s17, 4   ;;  %s4124_s13 = smov %s3270_s14 }
 0x25d   : > { %s4125_s14 = smov %s3395_s11  ;;  %s4126_s15 = smov %s3278_s16 }
 0x25e   : > { %s4127_s16 = smov %s4129_s5  ;;  %19 = sbr.rel (!%p17_p9) target bundleno = 7 (0x7), region = 83 }
 0x263   :  { %2151 = vsyncpa [#allocation4], 1 }
 0x264   :  { %2153 = vsyncpa [#allocation4 + $0x1], 1 }
 0x265   :  { %2154 = vsyncpa [#allocation7], 1 }
 0x266   :  { %2155 = vsyncpa [#allocation5], 1 }
 0x267   :  { %2157 = vsyncpa [#allocation5 + $0x1], 1 }

</bundles_post_ra>
